<compile_context>
chip_gen: v6e
topology: v6e:2x2x1
jax: 0.10.0
libtpu: 0.0.40
codegen_flags: <defaults>
</compile_context>

<pallas_src>
import jax
import jax.numpy as jnp
from jax import lax
from jax.experimental import pallas as pl
from jax.experimental.pallas import tpu as pltpu
import numpy as np


def _lstm_fc_kernel(x_ref,      # (T, Bb, I)   bf16, time-major batch block
                    wih_ref,    # (I, 4Hp)     bf16 = padded W_ih^T
                    whh_ref,    # (Hp, 4Hp)    bf16 = padded W_hh^T
                    b_ref,      # (1, 4Hp)     f32  = padded (b_ih + b_hh)
                    wfc_ref,    # (Hp, O)      bf16 = padded W_fc^T
                    bfc_ref,    # (1, O)       f32  = b_fc
                    out_ref,    # (Bb, O)      f32
                    xp_ref):    # (T*Bb, 4Hp)  bf16 VMEM scratch (pre-projected gates)
    T, Bb, I = x_ref.shape
    Hp = whh_ref.shape[0]

    # --- Hoisted input projection: one MXU matmul + one bias broadcast -------
    # (Bb is a multiple of 8 so the leading-dim collapse is layout-preserving.)
    x2d = x_ref[...].reshape(T * Bb, I)                              # bf16
    xp_ref[...] = (jnp.dot(x2d, wih_ref[...],
                           preferred_element_type=jnp.float32)
                   + b_ref[...]).astype(jnp.bfloat16)                # (T*Bb, 4Hp)

    # --- Serial recurrence; h (bf16) and c (f32) carried in vregs ------------
    def step(t, carry):
        h, c = carry                                   # h: (Bb,Hp) bf16, c: f32
        row = pl.multiple_of(t * Bb, Bb)               # sublane-aligned hint
        gx = xp_ref[pl.ds(row, Bb), :]                 # (Bb, 4Hp) bf16
        # Only this matmul + the gate math below is on the serial chain.
        gates = (jnp.dot(h, whh_ref[...],
                         preferred_element_type=jnp.float32)
                 + gx.astype(jnp.float32))             # (Bb, 4Hp) f32
        # PyTorch nn.LSTM gate order: [i, f, g, o]; Hp % 128 == 0 -> each slab
        # is lane-aligned (pure VPU/EUP, no XLU relayout).  Gate math kept in
        # f32 (v5e has no bf16 VPU/EUP).
        i_g = jax.nn.sigmoid(gates[:, 0 * Hp:1 * Hp])
        f_g = jax.nn.sigmoid(gates[:, 1 * Hp:2 * Hp])
        g_g = jnp.tanh(gates[:, 2 * Hp:3 * Hp])
        o_g = jax.nn.sigmoid(gates[:, 3 * Hp:4 * Hp])
        c_new = f_g * c + i_g * g_g
        h_new = (o_g * jnp.tanh(c_new)).astype(jnp.bfloat16)
        return h_new, c_new

    h0 = jnp.zeros((Bb, Hp), jnp.bfloat16)             # matches torch.zeros h0/c0
    c0 = jnp.zeros((Bb, Hp), jnp.float32)
    unroll = T if T <= 8 else 8                        # bounded unroll (static)
    h_T, _ = lax.fori_loop(0, T, step, (h0, c0), unroll=unroll)

    # out = fc(h_T)
    out_ref[...] = (jnp.dot(h_T, wfc_ref[...],
                            preferred_element_type=jnp.float32)
                    + bfc_ref[...])


def prepare_params(w_ih, w_hh, b_ih, b_hh, w_fc, b_fc, lane=128):
    """One-time (model-load) weight prep, kept OUT of the per-call jit path:
    pad hidden size to a lane multiple (so gate slabs are lane-aligned),
    fuse biases, pre-transpose, cast matmul operands to bf16.

    NOTE(correctness): the Hp padding is only valid because the padded gate
    pre-activations are exactly zero (=> i=f=o=0.5, g=0 => padded c,h stay 0
    forever and padded W_fc columns are 0).  Do NOT fold a nonzero bias,
    layernorm, or nonzero initial state into the padded columns; the asserts
    below guard that invariant."""
    w_ih = np.asarray(w_ih, np.float32)   # (4H, I)
    w_hh = np.asarray(w_hh, np.float32)   # (4H, H)
    b_ih = np.asarray(b_ih, np.float32)
    b_hh = np.asarray(b_hh, np.float32)
    w_fc = np.asarray(w_fc, np.float32)   # (O, H)
    b_fc = np.asarray(b_fc, np.float32)

    H = w_hh.shape[1]
    I = w_ih.shape[1]
    O = w_fc.shape[0]
    Hp = ((H + lane - 1) // lane) * lane

    wih_p = np.zeros((4 * Hp, I), np.float32)
    whh_p = np.zeros((4 * Hp, Hp), np.float32)
    b_p = np.zeros((4 * Hp,), np.float32)
    b = b_ih + b_hh
    for k in range(4):                                   # scatter per gate slab
        wih_p[k * Hp:k * Hp + H, :] = w_ih[k * H:(k + 1) * H, :]
        whh_p[k * Hp:k * Hp + H, :H] = w_hh[k * H:(k + 1) * H, :]
        b_p[k * Hp:k * Hp + H] = b[k * H:(k + 1) * H]
    wfc_p = np.zeros((O, Hp), np.float32)
    wfc_p[:, :H] = w_fc

    # Guard the zero-padding invariant (see NOTE above).
    for k in range(4):
        assert not np.any(wih_p[k * Hp + H:(k + 1) * Hp, :])
        assert not np.any(whh_p[k * Hp + H:(k + 1) * Hp, :])
        assert not np.any(b_p[k * Hp + H:(k + 1) * Hp])
    assert not np.any(wfc_p[:, H:])

    wih_t = jnp.asarray(wih_p.T, jnp.bfloat16)           # (I, 4Hp)
    whh_t = jnp.asarray(whh_p.T, jnp.bfloat16)           # (Hp, 4Hp)
    b_f = jnp.asarray(b_p.reshape(1, 4 * Hp), jnp.float32)
    wfc_t = jnp.asarray(wfc_p.T, jnp.bfloat16)           # (Hp, O)
    bfc = jnp.asarray(b_fc.reshape(1, O), jnp.float32)
    return wih_t, whh_t, b_f, wfc_t, bfc


@jax.jit
def lstm_predictor_forward(x, wih_t, whh_t, b, wfc_t, bfc):
    """x: (B, T, I) float32 (batch_first, like the PyTorch module)."""
    B, T, I = x.shape
    Hp = whh_t.shape[0]
    G = 4 * Hp
    O = wfc_t.shape[1]

    # Pad batch to the f32 sublane and choose the per-grid-step batch block:
    # keep M of the recurrent matmul as large as possible (<=128) before
    # sharding batch across grid steps / TensorCores.
    Bp = ((B + 7) // 8) * 8
    if Bp <= 128:
        Bb = Bp
    else:
        Bp = ((Bp + 127) // 128) * 128
        Bb = 128
    n_blocks = Bp // Bb

    x_p = x.astype(jnp.bfloat16)
    if Bp != B:
        x_p = jnp.pad(x_p, ((0, Bp - B), (0, 0), (0, 0)))
    # Time-major so per-step slices are contiguous leading-dim slabs.
    # TODO(synk): at scale, drop this extra HBM pass (feed batch-major + use
    #             pl.ds(..., stride=T) or a BlockSpec grid over T).
    x_tm = jnp.transpose(x_p, (1, 0, 2))                 # (T, Bp, I)

    # Explicit VMEM budget (bf16 xp scratch dominates); generous headroom,
    # capped below v7x's 64 MiB physical VMEM.
    bf2, f4 = 2, 4
    vmem_est = (2 * T * Bb * I * bf2                      # x block (double-buffered)
                + T * Bb * G * bf2                        # xp scratch
                + 2 * (I * G * bf2 + Hp * G * bf2 + G * f4
                       + Hp * O * bf2 + O * f4)           # weights/bias blocks
                + 2 * Bb * O * f4)                        # out block
    vmem_limit = int(min(max(4 * vmem_est, 16 * 2 ** 20), 64 * 2 ** 20))

    grid_spec = pltpu.PrefetchScalarGridSpec(
        num_scalar_prefetch=0,
        grid=(n_blocks,),
        in_specs=[
            pl.BlockSpec((T, Bb, I), lambda bb: (0, bb, 0)),   # x (batch-sharded)
            pl.BlockSpec((I, G), lambda bb: (0, 0)),            # W_ih^T
            pl.BlockSpec((Hp, G), lambda bb: (0, 0)),            # W_hh^T
            pl.BlockSpec((1, G), lambda bb: (0, 0)),             # bias
            pl.BlockSpec((Hp, O), lambda bb: (0, 0)),            # W_fc^T
            pl.BlockSpec((1, O), lambda bb: (0, 0)),             # b_fc
        ],
        out_specs=pl.BlockSpec((Bb, O), lambda bb: (bb, 0)),
        scratch_shapes=[pltpu.VMEM((T * Bb, G), jnp.bfloat16)],  # pre-projected gates
    )

    out = pl.pallas_call(
        _lstm_fc_kernel,
        out_shape=jax.ShapeDtypeStruct((Bp, O), jnp.float32),
        grid_spec=grid_spec,
        compiler_params=pltpu.CompilerParams(
            dimension_semantics=("parallel",),       # batch shards -> both v7x TCs
            vmem_limit_bytes=vmem_limit),
    )(x_tm, wih_t, whh_t, b, wfc_t, bfc)
    return out[:B]


def _reference_forward(x, w_ih, w_hh, b_ih, b_hh, w_fc, b_fc):
    """Pure-JAX f32 reference matching nn.LSTM + nn.Linear semantics."""
    B, T, I = x.shape
    H = w_hh.shape[1]
    h = jnp.zeros((B, H), jnp.float32)
    c = jnp.zeros((B, H), jnp.float32)
    for t in range(T):
        gates = x[:, t, :] @ w_ih.T + b_ih + h @ w_hh.T + b_hh
        i_g = jax.nn.sigmoid(gates[:, 0 * H:1 * H])
        f_g = jax.nn.sigmoid(gates[:, 1 * H:2 * H])
        g_g = jnp.tanh(gates[:, 2 * H:3 * H])
        o_g = jax.nn.sigmoid(gates[:, 3 * H:4 * H])
        c = f_g * c + i_g * g_g
        h = o_g * jnp.tanh(c)
    return h @ w_fc.T + b_fc


if __name__ == "__main__":
    # Small shapes consistent with the module: batch=2, seq=8, input=16,
    # hidden=32, output=4, num_layers=1.
    B, T, I, H, O = 2, 8, 16, 32, 4

    key = jax.random.PRNGKey(0)
    kx, k1, k2, k3, k4, k5, k6 = jax.random.split(key, 7)

    # PyTorch-style uniform(-1/sqrt(H), 1/sqrt(H)) init, deterministic.
    s = 1.0 / np.sqrt(H)
    w_ih = jax.random.uniform(k1, (4 * H, I), jnp.float32, -s, s)
    w_hh = jax.random.uniform(k2, (4 * H, H), jnp.float32, -s, s)
    b_ih = jax.random.uniform(k3, (4 * H,), jnp.float32, -s, s)
    b_hh = jax.random.uniform(k4, (4 * H,), jnp.float32, -s, s)
    w_fc = jax.random.uniform(k5, (O, H), jnp.float32, -s, s)
    b_fc = jax.random.uniform(k6, (O,), jnp.float32, -s, s)

    x = jax.random.normal(kx, (B, T, I), jnp.float32)

    params = prepare_params(w_ih, w_hh, b_ih, b_hh, w_fc, b_fc)
    out = lstm_predictor_forward(x, *params)
    out = jax.block_until_ready(out)

    # NOTE: bf16 recurrent-matmul operands feed small rounding error back
    # through h/c each step; fine at T=8.  For very long sequences, re-validate
    # drift or keep the (tiny) recurrent matmul in f32.
    ref = _reference_forward(x, w_ih, w_hh, b_ih, b_hh, w_fc, b_fc)
    np.testing.assert_allclose(np.asarray(out), np.asarray(ref),
                               rtol=2e-2, atol=2e-2)

    print("KERNEL_OK")
</pallas_src>

<mosaic_0001>
module attributes {stable_mosaic.version = 11 : i64} {
  func.func @_lstm_fc_kernel(%arg0: i32, %arg1: memref<8x8x16xbf16, #tpu.memory_space<vmem>>, %arg2: memref<16x512xbf16, #tpu.memory_space<vmem>>, %arg3: memref<128x512xbf16, #tpu.memory_space<vmem>>, %arg4: memref<1x512xf32, #tpu.memory_space<vmem>>, %arg5: memref<128x4xbf16, #tpu.memory_space<vmem>>, %arg6: memref<1x4xf32, #tpu.memory_space<vmem>>, %arg7: memref<8x4xf32, #tpu.memory_space<vmem>>, %arg8: memref<64x512xbf16, #tpu.memory_space<vmem>>) attributes {dimension_semantics = [#tpu.dimension_semantics<parallel>], iteration_bounds = array<i64: 1>, scalar_prefetch = 0 : i64, scratch_operands = 1 : i64, tpu.core_type = #tpu.core_type<tc>, window_params = [{transform_indices = @transform_0, window_bounds = array<i64: 8, 8, 16>}, {pipeline_mode = #tpu.pipeline_mode<synchronous>, transform_indices = @transform_1, window_bounds = array<i64: 16, 512>}, {pipeline_mode = #tpu.pipeline_mode<synchronous>, transform_indices = @transform_2, window_bounds = array<i64: 128, 512>}, {pipeline_mode = #tpu.pipeline_mode<synchronous>, transform_indices = @transform_3, window_bounds = array<i64: 1, 512>}, {pipeline_mode = #tpu.pipeline_mode<synchronous>, transform_indices = @transform_4, window_bounds = array<i64: 128, 4>}, {pipeline_mode = #tpu.pipeline_mode<synchronous>, transform_indices = @transform_5, window_bounds = array<i64: 1, 4>}, {transform_indices = @transform_6, window_bounds = array<i64: 8, 4>}]} {
    %c0 = arith.constant 0 : index
    %c0_0 = arith.constant 0 : index
    %c0_1 = arith.constant 0 : index
    %0 = vector.load %arg1[%c0, %c0_0, %c0_1] : memref<8x8x16xbf16, #tpu.memory_space<vmem>>, vector<8x8x16xbf16>
    %1 = vector.shape_cast %0 : vector<8x8x16xbf16> to vector<64x16xbf16>
    %c0_2 = arith.constant 0 : index
    %c0_3 = arith.constant 0 : index
    %2 = vector.load %arg2[%c0_2, %c0_3] : memref<16x512xbf16, #tpu.memory_space<vmem>>, vector<16x512xbf16>
    %cst = arith.constant dense<0.000000e+00> : vector<64x512xf32>
    %3 = tpu.matmul %1, %2, %cst {dimension_numbers = #tpu.dot_dimension_numbers<[1], [0], [0], [1], [0, 0, 1, 1], [], []>} : vector<64x16xbf16>, vector<16x512xbf16>, vector<64x512xf32> -> vector<64x512xf32>
    %c0_4 = arith.constant 0 : index
    %c0_5 = arith.constant 0 : index
    %4 = vector.load %arg4[%c0_4, %c0_5] : memref<1x512xf32, #tpu.memory_space<vmem>>, vector<1x512xf32>
    %5 = vector.broadcast %4 : vector<1x512xf32> to vector<64x512xf32>
    %6 = arith.addf %3, %5 : vector<64x512xf32>
    %7 = arith.truncf %6 : vector<64x512xf32> to vector<64x512xbf16>
    %c0_6 = arith.constant 0 : index
    %c0_7 = arith.constant 0 : index
    %8 = vector.load %arg8[%c0_6, %c0_7] : memref<64x512xbf16, #tpu.memory_space<vmem>>, vector<64x512xbf16>
    tpu.vector_store %arg8[%c0_6, %c0_7], %7 {strides = array<i32>} : memref<64x512xbf16, #tpu.memory_space<vmem>>, vector<64x512xbf16>,
    %cst_8 = arith.constant 0.000000e+00 : bf16
    %9 = vector.broadcast %cst_8 : bf16 to vector<8x128xbf16>
    %cst_9 = arith.constant 0.000000e+00 : f32
    %10 = vector.broadcast %cst_9 : f32 to vector<8x128xf32>
    %c0_i32 = arith.constant 0 : i32
    %c8_i32 = arith.constant 8 : i32
    %11 = arith.muli %c0_i32, %c8_i32 : i32
    %12 = tpu.assume_multiple %11, 8 : i32
    %13 = arith.index_cast %12 : i32 to index
    %c0_10 = arith.constant 0 : index
    %14 = vector.load %arg8[%13, %c0_10] : memref<64x512xbf16, #tpu.memory_space<vmem>>, vector<8x512xbf16>
    %c0_11 = arith.constant 0 : index
    %c0_12 = arith.constant 0 : index
    %15 = vector.load %arg3[%c0_11, %c0_12] : memref<128x512xbf16, #tpu.memory_space<vmem>>, vector<128x512xbf16>
    %cst_13 = arith.constant dense<0.000000e+00> : vector<8x512xf32>
    %16 = tpu.matmul %9, %15, %cst_13 {dimension_numbers = #tpu.dot_dimension_numbers<[1], [0], [0], [1], [0, 0, 1, 1], [], []>} : vector<8x128xbf16>, vector<128x512xbf16>, vector<8x512xf32> -> vector<8x512xf32>
    %17 = arith.extf %14 : vector<8x512xbf16> to vector<8x512xf32>
    %18 = arith.addf %16, %17 : vector<8x512xf32>
    %19 = vector.extract_strided_slice %18 {offsets = [0, 0], sizes = [8, 128], strides = [1, 1]} : vector<8x512xf32> to vector<8x128xf32>
    %20 = arith.negf %19 : vector<8x128xf32>
    %21 = math.exp %20 : vector<8x128xf32>
    %cst_14 = arith.constant 1.000000e+00 : f32
    %22 = vector.broadcast %cst_14 : f32 to vector<8x128xf32>
    %23 = arith.addf %22, %21 : vector<8x128xf32>
    %24 = arith.divf %22, %23 : vector<8x128xf32>
    %25 = vector.extract_strided_slice %18 {offsets = [0, 128], sizes = [8, 128], strides = [1, 1]} : vector<8x512xf32> to vector<8x128xf32>
    %26 = arith.negf %25 : vector<8x128xf32>
    %27 = math.exp %26 : vector<8x128xf32>
    %cst_15 = arith.constant 1.000000e+00 : f32
    %28 = vector.broadcast %cst_15 : f32 to vector<8x128xf32>
    %29 = arith.addf %28, %27 : vector<8x128xf32>
    %30 = arith.divf %28, %29 : vector<8x128xf32>
    %31 = vector.extract_strided_slice %18 {offsets = [0, 256], sizes = [8, 128], strides = [1, 1]} : vector<8x512xf32> to vector<8x128xf32>
    %32 = math.tanh %31 : vector<8x128xf32>
    %33 = vector.extract_strided_slice %18 {offsets = [0, 384], sizes = [8, 128], strides = [1, 1]} : vector<8x512xf32> to vector<8x128xf32>
    %34 = arith.negf %33 : vector<8x128xf32>
    %35 = math.exp %34 : vector<8x128xf32>
    %cst_16 = arith.constant 1.000000e+00 : f32
    %36 = vector.broadcast %cst_16 : f32 to vector<8x128xf32>
    %37 = arith.addf %36, %35 : vector<8x128xf32>
    %38 = arith.divf %36, %37 : vector<8x128xf32>
    %39 = arith.mulf %30, %10 : vector<8x128xf32>
    %40 = arith.mulf %24, %32 : vector<8x128xf32>
    %41 = arith.addf %39, %40 : vector<8x128xf32>
    %42 = math.tanh %41 : vector<8x128xf32>
    %43 = arith.mulf %38, %42 : vector<8x128xf32>
    %44 = arith.truncf %43 : vector<8x128xf32> to vector<8x128xbf16>
    %c1_i32 = arith.constant 1 : i32
    %c8_i32_17 = arith.constant 8 : i32
    %45 = arith.muli %c1_i32, %c8_i32_17 : i32
    %46 = tpu.assume_multiple %45, 8 : i32
    %47 = arith.index_cast %46 : i32 to index
    %c0_18 = arith.constant 0 : index
    %48 = vector.load %arg8[%47, %c0_18] : memref<64x512xbf16, #tpu.memory_space<vmem>>, vector<8x512xbf16>
    %c0_19 = arith.constant 0 : index
    %c0_20 = arith.constant 0 : index
    %49 = vector.load %arg3[%c0_19, %c0_20] : memref<128x512xbf16, #tpu.memory_space<vmem>>, vector<128x512xbf16>
    %cst_21 = arith.constant dense<0.000000e+00> : vector<8x512xf32>
    %50 = tpu.matmul %44, %49, %cst_21 {dimension_numbers = #tpu.dot_dimension_numbers<[1], [0], [0], [1], [0, 0, 1, 1], [], []>} : vector<8x128xbf16>, vector<128x512xbf16>, vector<8x512xf32> -> vector<8x512xf32>
    %51 = arith.extf %48 : vector<8x512xbf16> to vector<8x512xf32>
    %52 = arith.addf %50, %51 : vector<8x512xf32>
    %53 = vector.extract_strided_slice %52 {offsets = [0, 0], sizes = [8, 128], strides = [1, 1]} : vector<8x512xf32> to vector<8x128xf32>
    %54 = arith.negf %53 : vector<8x128xf32>
    %55 = math.exp %54 : vector<8x128xf32>
    %cst_22 = arith.constant 1.000000e+00 : f32
    %56 = vector.broadcast %cst_22 : f32 to vector<8x128xf32>
    %57 = arith.addf %56, %55 : vector<8x128xf32>
    %58 = arith.divf %56, %57 : vector<8x128xf32>
    %59 = vector.extract_strided_slice %52 {offsets = [0, 128], sizes = [8, 128], strides = [1, 1]} : vector<8x512xf32> to vector<8x128xf32>
    %60 = arith.negf %59 : vector<8x128xf32>
    %61 = math.exp %60 : vector<8x128xf32>
    %cst_23 = arith.constant 1.000000e+00 : f32
    %62 = vector.broadcast %cst_23 : f32 to vector<8x128xf32>
    %63 = arith.addf %62, %61 : vector<8x128xf32>
    %64 = arith.divf %62, %63 : vector<8x128xf32>
    %65 = vector.extract_strided_slice %52 {offsets = [0, 256], sizes = [8, 128], strides = [1, 1]} : vector<8x512xf32> to vector<8x128xf32>
    %66 = math.tanh %65 : vector<8x128xf32>
    %67 = vector.extract_strided_slice %52 {offsets = [0, 384], sizes = [8, 128], strides = [1, 1]} : vector<8x512xf32> to vector<8x128xf32>
    %68 = arith.negf %67 : vector<8x128xf32>
    %69 = math.exp %68 : vector<8x128xf32>
    %cst_24 = arith.constant 1.000000e+00 : f32
    %70 = vector.broadcast %cst_24 : f32 to vector<8x128xf32>
    %71 = arith.addf %70, %69 : vector<8x128xf32>
    %72 = arith.divf %70, %71 : vector<8x128xf32>
    %73 = arith.mulf %64, %41 : vector<8x128xf32>
    %74 = arith.mulf %58, %66 : vector<8x128xf32>
    %75 = arith.addf %73, %74 : vector<8x128xf32>
    %76 = math.tanh %75 : vector<8x128xf32>
    %77 = arith.mulf %72, %76 : vector<8x128xf32>
    %78 = arith.truncf %77 : vector<8x128xf32> to vector<8x128xbf16>
    %c2_i32 = arith.constant 2 : i32
    %c8_i32_25 = arith.constant 8 : i32
    %79 = arith.muli %c2_i32, %c8_i32_25 : i32
    %80 = tpu.assume_multiple %79, 8 : i32
    %81 = arith.index_cast %80 : i32 to index
    %c0_26 = arith.constant 0 : index
    %82 = vector.load %arg8[%81, %c0_26] : memref<64x512xbf16, #tpu.memory_space<vmem>>, vector<8x512xbf16>
    %c0_27 = arith.constant 0 : index
    %c0_28 = arith.constant 0 : index
    %83 = vector.load %arg3[%c0_27, %c0_28] : memref<128x512xbf16, #tpu.memory_space<vmem>>, vector<128x512xbf16>
    %cst_29 = arith.constant dense<0.000000e+00> : vector<8x512xf32>
    %84 = tpu.matmul %78, %83, %cst_29 {dimension_numbers = #tpu.dot_dimension_numbers<[1], [0], [0], [1], [0, 0, 1, 1], [], []>} : vector<8x128xbf16>, vector<128x512xbf16>, vector<8x512xf32> -> vector<8x512xf32>
    %85 = arith.extf %82 : vector<8x512xbf16> to vector<8x512xf32>
    %86 = arith.addf %84, %85 : vector<8x512xf32>
    %87 = vector.extract_strided_slice %86 {offsets = [0, 0], sizes = [8, 128], strides = [1, 1]} : vector<8x512xf32> to vector<8x128xf32>
    %88 = arith.negf %87 : vector<8x128xf32>
    %89 = math.exp %88 : vector<8x128xf32>
    %cst_30 = arith.constant 1.000000e+00 : f32
    %90 = vector.broadcast %cst_30 : f32 to vector<8x128xf32>
    %91 = arith.addf %90, %89 : vector<8x128xf32>
    %92 = arith.divf %90, %91 : vector<8x128xf32>
    %93 = vector.extract_strided_slice %86 {offsets = [0, 128], sizes = [8, 128], strides = [1, 1]} : vector<8x512xf32> to vector<8x128xf32>
    %94 = arith.negf %93 : vector<8x128xf32>
    %95 = math.exp %94 : vector<8x128xf32>
    %cst_31 = arith.constant 1.000000e+00 : f32
    %96 = vector.broadcast %cst_31 : f32 to vector<8x128xf32>
    %97 = arith.addf %96, %95 : vector<8x128xf32>
    %98 = arith.divf %96, %97 : vector<8x128xf32>
    %99 = vector.extract_strided_slice %86 {offsets = [0, 256], sizes = [8, 128], strides = [1, 1]} : vector<8x512xf32> to vector<8x128xf32>
    %100 = math.tanh %99 : vector<8x128xf32>
    %101 = vector.extract_strided_slice %86 {offsets = [0, 384], sizes = [8, 128], strides = [1, 1]} : vector<8x512xf32> to vector<8x128xf32>
    %102 = arith.negf %101 : vector<8x128xf32>
    %103 = math.exp %102 : vector<8x128xf32>
    %cst_32 = arith.constant 1.000000e+00 : f32
    %104 = vector.broadcast %cst_32 : f32 to vector<8x128xf32>
    %105 = arith.addf %104, %103 : vector<8x128xf32>
    %106 = arith.divf %104, %105 : vector<8x128xf32>
    %107 = arith.mulf %98, %75 : vector<8x128xf32>
    %108 = arith.mulf %92, %100 : vector<8x128xf32>
    %109 = arith.addf %107, %108 : vector<8x128xf32>
    %110 = math.tanh %109 : vector<8x128xf32>
    %111 = arith.mulf %106, %110 : vector<8x128xf32>
    %112 = arith.truncf %111 : vector<8x128xf32> to vector<8x128xbf16>
    %c3_i32 = arith.constant 3 : i32
    %c8_i32_33 = arith.constant 8 : i32
    %113 = arith.muli %c3_i32, %c8_i32_33 : i32
    %114 = tpu.assume_multiple %113, 8 : i32
    %115 = arith.index_cast %114 : i32 to index
    %c0_34 = arith.constant 0 : index
    %116 = vector.load %arg8[%115, %c0_34] : memref<64x512xbf16, #tpu.memory_space<vmem>>, vector<8x512xbf16>
    %c0_35 = arith.constant 0 : index
    %c0_36 = arith.constant 0 : index
    %117 = vector.load %arg3[%c0_35, %c0_36] : memref<128x512xbf16, #tpu.memory_space<vmem>>, vector<128x512xbf16>
    %cst_37 = arith.constant dense<0.000000e+00> : vector<8x512xf32>
    %118 = tpu.matmul %112, %117, %cst_37 {dimension_numbers = #tpu.dot_dimension_numbers<[1], [0], [0], [1], [0, 0, 1, 1], [], []>} : vector<8x128xbf16>, vector<128x512xbf16>, vector<8x512xf32> -> vector<8x512xf32>
    %119 = arith.extf %116 : vector<8x512xbf16> to vector<8x512xf32>
    %120 = arith.addf %118, %119 : vector<8x512xf32>
    %121 = vector.extract_strided_slice %120 {offsets = [0, 0], sizes = [8, 128], strides = [1, 1]} : vector<8x512xf32> to vector<8x128xf32>
    %122 = arith.negf %121 : vector<8x128xf32>
    %123 = math.exp %122 : vector<8x128xf32>
    %cst_38 = arith.constant 1.000000e+00 : f32
    %124 = vector.broadcast %cst_38 : f32 to vector<8x128xf32>
    %125 = arith.addf %124, %123 : vector<8x128xf32>
    %126 = arith.divf %124, %125 : vector<8x128xf32>
    %127 = vector.extract_strided_slice %120 {offsets = [0, 128], sizes = [8, 128], strides = [1, 1]} : vector<8x512xf32> to vector<8x128xf32>
    %128 = arith.negf %127 : vector<8x128xf32>
    %129 = math.exp %128 : vector<8x128xf32>
    %cst_39 = arith.constant 1.000000e+00 : f32
    %130 = vector.broadcast %cst_39 : f32 to vector<8x128xf32>
    %131 = arith.addf %130, %129 : vector<8x128xf32>
    %132 = arith.divf %130, %131 : vector<8x128xf32>
    %133 = vector.extract_strided_slice %120 {offsets = [0, 256], sizes = [8, 128], strides = [1, 1]} : vector<8x512xf32> to vector<8x128xf32>
    %134 = math.tanh %133 : vector<8x128xf32>
    %135 = vector.extract_strided_slice %120 {offsets = [0, 384], sizes = [8, 128], strides = [1, 1]} : vector<8x512xf32> to vector<8x128xf32>
    %136 = arith.negf %135 : vector<8x128xf32>
    %137 = math.exp %136 : vector<8x128xf32>
    %cst_40 = arith.constant 1.000000e+00 : f32
    %138 = vector.broadcast %cst_40 : f32 to vector<8x128xf32>
    %139 = arith.addf %138, %137 : vector<8x128xf32>
    %140 = arith.divf %138, %139 : vector<8x128xf32>
    %141 = arith.mulf %132, %109 : vector<8x128xf32>
    %142 = arith.mulf %126, %134 : vector<8x128xf32>
    %143 = arith.addf %141, %142 : vector<8x128xf32>
    %144 = math.tanh %143 : vector<8x128xf32>
    %145 = arith.mulf %140, %144 : vector<8x128xf32>
    %146 = arith.truncf %145 : vector<8x128xf32> to vector<8x128xbf16>
    %c4_i32 = arith.constant 4 : i32
    %c8_i32_41 = arith.constant 8 : i32
    %147 = arith.muli %c4_i32, %c8_i32_41 : i32
    %148 = tpu.assume_multiple %147, 8 : i32
    %149 = arith.index_cast %148 : i32 to index
    %c0_42 = arith.constant 0 : index
    %150 = vector.load %arg8[%149, %c0_42] : memref<64x512xbf16, #tpu.memory_space<vmem>>, vector<8x512xbf16>
    %c0_43 = arith.constant 0 : index
    %c0_44 = arith.constant 0 : index
    %151 = vector.load %arg3[%c0_43, %c0_44] : memref<128x512xbf16, #tpu.memory_space<vmem>>, vector<128x512xbf16>
    %cst_45 = arith.constant dense<0.000000e+00> : vector<8x512xf32>
    %152 = tpu.matmul %146, %151, %cst_45 {dimension_numbers = #tpu.dot_dimension_numbers<[1], [0], [0], [1], [0, 0, 1, 1], [], []>} : vector<8x128xbf16>, vector<128x512xbf16>, vector<8x512xf32> -> vector<8x512xf32>
    %153 = arith.extf %150 : vector<8x512xbf16> to vector<8x512xf32>
    %154 = arith.addf %152, %153 : vector<8x512xf32>
    %155 = vector.extract_strided_slice %154 {offsets = [0, 0], sizes = [8, 128], strides = [1, 1]} : vector<8x512xf32> to vector<8x128xf32>
    %156 = arith.negf %155 : vector<8x128xf32>
    %157 = math.exp %156 : vector<8x128xf32>
    %cst_46 = arith.constant 1.000000e+00 : f32
    %158 = vector.broadcast %cst_46 : f32 to vector<8x128xf32>
    %159 = arith.addf %158, %157 : vector<8x128xf32>
    %160 = arith.divf %158, %159 : vector<8x128xf32>
    %161 = vector.extract_strided_slice %154 {offsets = [0, 128], sizes = [8, 128], strides = [1, 1]} : vector<8x512xf32> to vector<8x128xf32>
    %162 = arith.negf %161 : vector<8x128xf32>
    %163 = math.exp %162 : vector<8x128xf32>
    %cst_47 = arith.constant 1.000000e+00 : f32
    %164 = vector.broadcast %cst_47 : f32 to vector<8x128xf32>
    %165 = arith.addf %164, %163 : vector<8x128xf32>
    %166 = arith.divf %164, %165 : vector<8x128xf32>
    %167 = vector.extract_strided_slice %154 {offsets = [0, 256], sizes = [8, 128], strides = [1, 1]} : vector<8x512xf32> to vector<8x128xf32>
    %168 = math.tanh %167 : vector<8x128xf32>
    %169 = vector.extract_strided_slice %154 {offsets = [0, 384], sizes = [8, 128], strides = [1, 1]} : vector<8x512xf32> to vector<8x128xf32>
    %170 = arith.negf %169 : vector<8x128xf32>
    %171 = math.exp %170 : vector<8x128xf32>
    %cst_48 = arith.constant 1.000000e+00 : f32
    %172 = vector.broadcast %cst_48 : f32 to vector<8x128xf32>
    %173 = arith.addf %172, %171 : vector<8x128xf32>
    %174 = arith.divf %172, %173 : vector<8x128xf32>
    %175 = arith.mulf %166, %143 : vector<8x128xf32>
    %176 = arith.mulf %160, %168 : vector<8x128xf32>
    %177 = arith.addf %175, %176 : vector<8x128xf32>
    %178 = math.tanh %177 : vector<8x128xf32>
    %179 = arith.mulf %174, %178 : vector<8x128xf32>
    %180 = arith.truncf %179 : vector<8x128xf32> to vector<8x128xbf16>
    %c5_i32 = arith.constant 5 : i32
    %c8_i32_49 = arith.constant 8 : i32
    %181 = arith.muli %c5_i32, %c8_i32_49 : i32
    %182 = tpu.assume_multiple %181, 8 : i32
    %183 = arith.index_cast %182 : i32 to index
    %c0_50 = arith.constant 0 : index
    %184 = vector.load %arg8[%183, %c0_50] : memref<64x512xbf16, #tpu.memory_space<vmem>>, vector<8x512xbf16>
    %c0_51 = arith.constant 0 : index
    %c0_52 = arith.constant 0 : index
    %185 = vector.load %arg3[%c0_51, %c0_52] : memref<128x512xbf16, #tpu.memory_space<vmem>>, vector<128x512xbf16>
    %cst_53 = arith.constant dense<0.000000e+00> : vector<8x512xf32>
    %186 = tpu.matmul %180, %185, %cst_53 {dimension_numbers = #tpu.dot_dimension_numbers<[1], [0], [0], [1], [0, 0, 1, 1], [], []>} : vector<8x128xbf16>, vector<128x512xbf16>, vector<8x512xf32> -> vector<8x512xf32>
    %187 = arith.extf %184 : vector<8x512xbf16> to vector<8x512xf32>
    %188 = arith.addf %186, %187 : vector<8x512xf32>
    %189 = vector.extract_strided_slice %188 {offsets = [0, 0], sizes = [8, 128], strides = [1, 1]} : vector<8x512xf32> to vector<8x128xf32>
    %190 = arith.negf %189 : vector<8x128xf32>
    %191 = math.exp %190 : vector<8x128xf32>
    %cst_54 = arith.constant 1.000000e+00 : f32
    %192 = vector.broadcast %cst_54 : f32 to vector<8x128xf32>
    %193 = arith.addf %192, %191 : vector<8x128xf32>
    %194 = arith.divf %192, %193 : vector<8x128xf32>
    %195 = vector.extract_strided_slice %188 {offsets = [0, 128], sizes = [8, 128], strides = [1, 1]} : vector<8x512xf32> to vector<8x128xf32>
    %196 = arith.negf %195 : vector<8x128xf32>
    %197 = math.exp %196 : vector<8x128xf32>
    %cst_55 = arith.constant 1.000000e+00 : f32
    %198 = vector.broadcast %cst_55 : f32 to vector<8x128xf32>
    %199 = arith.addf %198, %197 : vector<8x128xf32>
    %200 = arith.divf %198, %199 : vector<8x128xf32>
    %201 = vector.extract_strided_slice %188 {offsets = [0, 256], sizes = [8, 128], strides = [1, 1]} : vector<8x512xf32> to vector<8x128xf32>
    %202 = math.tanh %201 : vector<8x128xf32>
    %203 = vector.extract_strided_slice %188 {offsets = [0, 384], sizes = [8, 128], strides = [1, 1]} : vector<8x512xf32> to vector<8x128xf32>
    %204 = arith.negf %203 : vector<8x128xf32>
    %205 = math.exp %204 : vector<8x128xf32>
    %cst_56 = arith.constant 1.000000e+00 : f32
    %206 = vector.broadcast %cst_56 : f32 to vector<8x128xf32>
    %207 = arith.addf %206, %205 : vector<8x128xf32>
    %208 = arith.divf %206, %207 : vector<8x128xf32>
    %209 = arith.mulf %200, %177 : vector<8x128xf32>
    %210 = arith.mulf %194, %202 : vector<8x128xf32>
    %211 = arith.addf %209, %210 : vector<8x128xf32>
    %212 = math.tanh %211 : vector<8x128xf32>
    %213 = arith.mulf %208, %212 : vector<8x128xf32>
    %214 = arith.truncf %213 : vector<8x128xf32> to vector<8x128xbf16>
    %c6_i32 = arith.constant 6 : i32
    %c8_i32_57 = arith.constant 8 : i32
    %215 = arith.muli %c6_i32, %c8_i32_57 : i32
    %216 = tpu.assume_multiple %215, 8 : i32
    %217 = arith.index_cast %216 : i32 to index
    %c0_58 = arith.constant 0 : index
    %218 = vector.load %arg8[%217, %c0_58] : memref<64x512xbf16, #tpu.memory_space<vmem>>, vector<8x512xbf16>
    %c0_59 = arith.constant 0 : index
    %c0_60 = arith.constant 0 : index
    %219 = vector.load %arg3[%c0_59, %c0_60] : memref<128x512xbf16, #tpu.memory_space<vmem>>, vector<128x512xbf16>
    %cst_61 = arith.constant dense<0.000000e+00> : vector<8x512xf32>
    %220 = tpu.matmul %214, %219, %cst_61 {dimension_numbers = #tpu.dot_dimension_numbers<[1], [0], [0], [1], [0, 0, 1, 1], [], []>} : vector<8x128xbf16>, vector<128x512xbf16>, vector<8x512xf32> -> vector<8x512xf32>
    %221 = arith.extf %218 : vector<8x512xbf16> to vector<8x512xf32>
    %222 = arith.addf %220, %221 : vector<8x512xf32>
    %223 = vector.extract_strided_slice %222 {offsets = [0, 0], sizes = [8, 128], strides = [1, 1]} : vector<8x512xf32> to vector<8x128xf32>
    %224 = arith.negf %223 : vector<8x128xf32>
    %225 = math.exp %224 : vector<8x128xf32>
    %cst_62 = arith.constant 1.000000e+00 : f32
    %226 = vector.broadcast %cst_62 : f32 to vector<8x128xf32>
    %227 = arith.addf %226, %225 : vector<8x128xf32>
    %228 = arith.divf %226, %227 : vector<8x128xf32>
    %229 = vector.extract_strided_slice %222 {offsets = [0, 128], sizes = [8, 128], strides = [1, 1]} : vector<8x512xf32> to vector<8x128xf32>
    %230 = arith.negf %229 : vector<8x128xf32>
    %231 = math.exp %230 : vector<8x128xf32>
    %cst_63 = arith.constant 1.000000e+00 : f32
    %232 = vector.broadcast %cst_63 : f32 to vector<8x128xf32>
    %233 = arith.addf %232, %231 : vector<8x128xf32>
    %234 = arith.divf %232, %233 : vector<8x128xf32>
    %235 = vector.extract_strided_slice %222 {offsets = [0, 256], sizes = [8, 128], strides = [1, 1]} : vector<8x512xf32> to vector<8x128xf32>
    %236 = math.tanh %235 : vector<8x128xf32>
    %237 = vector.extract_strided_slice %222 {offsets = [0, 384], sizes = [8, 128], strides = [1, 1]} : vector<8x512xf32> to vector<8x128xf32>
    %238 = arith.negf %237 : vector<8x128xf32>
    %239 = math.exp %238 : vector<8x128xf32>
    %cst_64 = arith.constant 1.000000e+00 : f32
    %240 = vector.broadcast %cst_64 : f32 to vector<8x128xf32>
    %241 = arith.addf %240, %239 : vector<8x128xf32>
    %242 = arith.divf %240, %241 : vector<8x128xf32>
    %243 = arith.mulf %234, %211 : vector<8x128xf32>
    %244 = arith.mulf %228, %236 : vector<8x128xf32>
    %245 = arith.addf %243, %244 : vector<8x128xf32>
    %246 = math.tanh %245 : vector<8x128xf32>
    %247 = arith.mulf %242, %246 : vector<8x128xf32>
    %248 = arith.truncf %247 : vector<8x128xf32> to vector<8x128xbf16>
    %c7_i32 = arith.constant 7 : i32
    %c8_i32_65 = arith.constant 8 : i32
    %249 = arith.muli %c7_i32, %c8_i32_65 : i32
    %250 = tpu.assume_multiple %249, 8 : i32
    %251 = arith.index_cast %250 : i32 to index
    %c0_66 = arith.constant 0 : index
    %252 = vector.load %arg8[%251, %c0_66] : memref<64x512xbf16, #tpu.memory_space<vmem>>, vector<8x512xbf16>
    %c0_67 = arith.constant 0 : index
    %c0_68 = arith.constant 0 : index
    %253 = vector.load %arg3[%c0_67, %c0_68] : memref<128x512xbf16, #tpu.memory_space<vmem>>, vector<128x512xbf16>
    %cst_69 = arith.constant dense<0.000000e+00> : vector<8x512xf32>
    %254 = tpu.matmul %248, %253, %cst_69 {dimension_numbers = #tpu.dot_dimension_numbers<[1], [0], [0], [1], [0, 0, 1, 1], [], []>} : vector<8x128xbf16>, vector<128x512xbf16>, vector<8x512xf32> -> vector<8x512xf32>
    %255 = arith.extf %252 : vector<8x512xbf16> to vector<8x512xf32>
    %256 = arith.addf %254, %255 : vector<8x512xf32>
    %257 = vector.extract_strided_slice %256 {offsets = [0, 0], sizes = [8, 128], strides = [1, 1]} : vector<8x512xf32> to vector<8x128xf32>
    %258 = arith.negf %257 : vector<8x128xf32>
    %259 = math.exp %258 : vector<8x128xf32>
    %cst_70 = arith.constant 1.000000e+00 : f32
    %260 = vector.broadcast %cst_70 : f32 to vector<8x128xf32>
    %261 = arith.addf %260, %259 : vector<8x128xf32>
    %262 = arith.divf %260, %261 : vector<8x128xf32>
    %263 = vector.extract_strided_slice %256 {offsets = [0, 128], sizes = [8, 128], strides = [1, 1]} : vector<8x512xf32> to vector<8x128xf32>
    %264 = arith.negf %263 : vector<8x128xf32>
    %265 = math.exp %264 : vector<8x128xf32>
    %cst_71 = arith.constant 1.000000e+00 : f32
    %266 = vector.broadcast %cst_71 : f32 to vector<8x128xf32>
    %267 = arith.addf %266, %265 : vector<8x128xf32>
    %268 = arith.divf %266, %267 : vector<8x128xf32>
    %269 = vector.extract_strided_slice %256 {offsets = [0, 256], sizes = [8, 128], strides = [1, 1]} : vector<8x512xf32> to vector<8x128xf32>
    %270 = math.tanh %269 : vector<8x128xf32>
    %271 = vector.extract_strided_slice %256 {offsets = [0, 384], sizes = [8, 128], strides = [1, 1]} : vector<8x512xf32> to vector<8x128xf32>
    %272 = arith.negf %271 : vector<8x128xf32>
    %273 = math.exp %272 : vector<8x128xf32>
    %cst_72 = arith.constant 1.000000e+00 : f32
    %274 = vector.broadcast %cst_72 : f32 to vector<8x128xf32>
    %275 = arith.addf %274, %273 : vector<8x128xf32>
    %276 = arith.divf %274, %275 : vector<8x128xf32>
    %277 = arith.mulf %268, %245 : vector<8x128xf32>
    %278 = arith.mulf %262, %270 : vector<8x128xf32>
    %279 = arith.addf %277, %278 : vector<8x128xf32>
    %280 = math.tanh %279 : vector<8x128xf32>
    %281 = arith.mulf %276, %280 : vector<8x128xf32>
    %282 = arith.truncf %281 : vector<8x128xf32> to vector<8x128xbf16>
    %c8_i32_73 = arith.constant 8 : i32
    %c0_74 = arith.constant 0 : index
    %c0_75 = arith.constant 0 : index
    %283 = vector.load %arg5[%c0_74, %c0_75] : memref<128x4xbf16, #tpu.memory_space<vmem>>, vector<128x4xbf16>
    %cst_76 = arith.constant dense<0.000000e+00> : vector<8x4xf32>
    %284 = tpu.matmul %282, %283, %cst_76 {dimension_numbers = #tpu.dot_dimension_numbers<[1], [0], [0], [1], [0, 0, 1, 1], [], []>} : vector<8x128xbf16>, vector<128x4xbf16>, vector<8x4xf32> -> vector<8x4xf32>
    %c0_77 = arith.constant 0 : index
    %c0_78 = arith.constant 0 : index
    %285 = vector.load %arg6[%c0_77, %c0_78] : memref<1x4xf32, #tpu.memory_space<vmem>>, vector<1x4xf32>
    %286 = vector.broadcast %285 : vector<1x4xf32> to vector<8x4xf32>
    %287 = arith.addf %284, %286 : vector<8x4xf32>
    %c0_79 = arith.constant 0 : index
    %c0_80 = arith.constant 0 : index
    %288 = vector.load %arg7[%c0_79, %c0_80] : memref<8x4xf32, #tpu.memory_space<vmem>>, vector<8x4xf32>
    tpu.vector_store %arg7[%c0_79, %c0_80], %287 {strides = array<i32>} : memref<8x4xf32, #tpu.memory_space<vmem>>, vector<8x4xf32>,
    return
  }
  func.func @transform_0(%arg0: i32) -> (i32, i32, i32) {
    %c0_i32 = arith.constant 0 : i32
    %c0_i32_0 = arith.constant 0 : i32
    %c0_i32_1 = arith.constant 0 : i32
    return %c0_i32, %arg0, %c0_i32_0 : i32, i32, i32
  }
  func.func @transform_1(%arg0: i32) -> (i32, i32) {
    %c0_i32 = arith.constant 0 : i32
    %c0_i32_0 = arith.constant 0 : i32
    %c0_i32_1 = arith.constant 0 : i32
    return %c0_i32, %c0_i32_0 : i32, i32
  }
  func.func @transform_2(%arg0: i32) -> (i32, i32) {
    %c0_i32 = arith.constant 0 : i32
    %c0_i32_0 = arith.constant 0 : i32
    %c0_i32_1 = arith.constant 0 : i32
    return %c0_i32, %c0_i32_0 : i32, i32
  }
  func.func @transform_3(%arg0: i32) -> (i32, i32) {
    %c0_i32 = arith.constant 0 : i32
    %c0_i32_0 = arith.constant 0 : i32
    %c0_i32_1 = arith.constant 0 : i32
    return %c0_i32, %c0_i32_0 : i32, i32
  }
  func.func @transform_4(%arg0: i32) -> (i32, i32) {
    %c0_i32 = arith.constant 0 : i32
    %c0_i32_0 = arith.constant 0 : i32
    %c0_i32_1 = arith.constant 0 : i32
    return %c0_i32, %c0_i32_0 : i32, i32
  }
  func.func @transform_5(%arg0: i32) -> (i32, i32) {
    %c0_i32 = arith.constant 0 : i32
    %c0_i32_0 = arith.constant 0 : i32
    %c0_i32_1 = arith.constant 0 : i32
    return %c0_i32, %c0_i32_0 : i32, i32
  }
  func.func @transform_6(%arg0: i32) -> (i32, i32) {
    %c0_i32 = arith.constant 0 : i32
    %c0_i32_0 = arith.constant 0 : i32
    return %arg0, %c0_i32 : i32, i32
  }
}

</mosaic_0001>

<bundles_post_ra>
// kernel: lstm_predictor_forward.1
= control target key start
LH: loop header
LB: loop body
LE: loop exit
PB: predicated region body
PF: predicated region fallthrough
CT: control target
= control target key end

     0   :  { %11 = vsyncpa [#allocation4], 0  ;;  %s2024_s21 = smov [#allocation3]   ;;  %s2673_s0 = inlined_call_operand.vmem [shape: bf16[8,8,16], index: 0, kind: input, shape index: {}]   ;;  %s2674_s1 = inlined_call_operand.vmem [shape: bf16[16,512], index: 1, kind: input, shape index: {}]   ;;  %s2675_s2 = inlined_call_operand.hbm [shape: bf16[128,512], index: 2, kind: input, shape index: {}]   ;;  %s2676_s3 = inlined_call_operand.vmem [shape: f32[1,512], index: 3, kind: input, shape index: {}]   ;;  %s2677_s4 = inlined_call_operand.vmem [shape: bf16[128,4], index: 4, kind: input, shape index: {}]   ;;  %s2678_s5 = inlined_call_operand.vmem [shape: f32[1,4], index: 5, kind: input, shape index: {}]   ;;  %s2679_s6 = inlined_call_operand.vmem [shape: f32[8,4], index: 6, kind: output, shape index: {}]  }
   0x1   :  { %s21_s22 = sshll.u32 %s2024_s21, 4  ;;  %s22_s22 = int_to_ptr.vmem [resolvable:$true] %s21_s22 }
   0x2   :  { %s2010_s23 = scalar_lea.vmem %s22_s22, 4096  ;;  %p2015_p1 = scmp.lt.s32.totalorder %s22_s22, %s22_s22 }
   0x3   :  { %p2011_p0 = scmp.ne.s32.totalorder %s22_s22, %s2010_s23  ;;  %p2016_p2 = scmp.lt.s32.totalorder %s2010_s23, %s2010_s23 }
   0x5   :  { %p2017_p3 = por %p2016_p2, %p2015_p1 }
   0x7   :  { %p2018_p4 = pnand %p2017_p3, %p2011_p0 }
   0x9   :  { %2021 = shalt.err (!%p2018_p4)
}
   0xa   :  { %s2025_s24 = smov 256   ;;  %s2026_s25 = smov 16  }
   0xb   :  { %27 = dma.hbm_to_vmem [thread:$0]  %s2675_s2, 4096, %s22_s22, [#allocation4], %s2025_s24, %s2025_s24, %s2026_s25  }
   0xc   :  { %2022 = dma.done.wait [#allocation4], 4096  }
   0xd   :  { %2023 = vsyncadd [#allocation4], 4294963200  ;;  %v2680_v0 = vmov 0   ;;  %v1776_v1 = vld [vmem:[%s2674_s1 + $0x4] ss:$16 sps:$4 sm:$0xff]   ;;  %vm112_vm0 = vcmask 130048   ;;  %v52_v41 = vlaneseq }
   0xe   :  { %157 = vmatprep.mubr.bf16.mxu0 %v2680_v0  ;;  %230 = vmatprep.mubr.bf16.mxu1 %v2680_v0  ;;  %v1778_v2 = vld [vmem:[%s2674_s1 + $0xc] ss:$16 sps:$4 sm:$0xff]   ;;  %v1780_v3 = vld [vmem:[%s2674_s1] ss:$16 sps:$4 sm:$0xff]   ;;  %v1781_v4 = vld [vmem:[%s2674_s1 + $0x8] ss:$16 sps:$4 sm:$0xff]  }
   0xf   :  { %139 = vmatprep.subr.bf16.mxu0 %v1776_v1  ;;  %212 = vmatprep.subr.bf16.mxu1 %v1778_v2  ;;  %v1782_v5 = vld [vmem:[%s2673_s0] sm:$0xff]   ;;  %v2087_v7 = vld [vmem:[#allocation3 + $0xec] ss:$16 sps:$4 sm:$0xff]   ;;  %v2092_v9 = vld [vmem:[#allocation3 + $0xe8] ss:$16 sps:$4 sm:$0xff]   ;;  %v53_v42 = vshrl.u32 %v52_v41, 7 }
  0x10   :  { %140 = vmatpush1.bf16.msra.mxu0 %v1780_v3  ;;  %213 = vmatpush1.bf16.msra.mxu1 %v1781_v4  ;;  %v2085_v6 = vld [vmem:[#allocation3 + $0xe4] ss:$16 sps:$4 sm:$0xff]   ;;  %v2089_v8 = vld [vmem:[#allocation3 + $0xe0] ss:$16 sps:$4 sm:$0xff]   ;;  %v2100_v11 = vld [vmem:[#allocation3 + $0xcc] ss:$16 sps:$4 sm:$0xff]  }
  0x11   :  { %584 = vmatprep.subr.bf16.mxu0 %v2085_v6  ;;  %v2096_v10 = vld [vmem:[#allocation3 + $0xc4] ss:$16 sps:$4 sm:$0xff]   ;;  %625 = vmatprep.subr.bf16.mxu1 %v2087_v7  ;;  %v2102_v12 = vld [vmem:[#allocation3 + $0xc0] ss:$16 sps:$4 sm:$0xff]   ;;  %v2104_v13 = vld [vmem:[#allocation3 + $0xc8] ss:$16 sps:$4 sm:$0xff]  }
  0x12   :  { %v1795_v14 = vld [vmem:[%s2673_s0 + $0x8] sm:$0xff]   ;;  %v2113_v15 = vld [vmem:[#allocation3 + $0xa4] ss:$16 sps:$4 sm:$0xff]   ;;  %v2119_v17 = vld [vmem:[#allocation3 + $0xa0] ss:$16 sps:$4 sm:$0xff]   ;;  %v62_v43 = vsub.s32 2, %v53_v42 }
  0x13   :  { %1636 = vmatmul.mubr.msk.bf16.vlgmr.msra.gmra.mxu0 %vm112_vm0, %v1782_v5  ;;  %1640 = vmatmul.mubr.msk.bf16.vlgmr.msra.gmra.mxu1 %vm112_vm0, %v1782_v5  ;;  %v2116_v16 = vld [vmem:[#allocation3 + $0xac] ss:$16 sps:$4 sm:$0xff]   ;;  %v2121_v18 = vld [vmem:[#allocation3 + $0xa8] ss:$16 sps:$4 sm:$0xff]   ;;  %v2125_v19 = vld [vmem:[#allocation3 + $0x84] ss:$16 sps:$4 sm:$0xff]  }
  0x14   :  { %585 = vmatpush1.bf16.msra.mxu0 %v2089_v8  ;;  %626 = vmatpush1.bf16.msra.mxu1 %v2092_v9  ;;  %v2128_v20 = vld [vmem:[#allocation3 + $0x8c] ss:$16 sps:$4 sm:$0xff]   ;;  %v2132_v21 = vld [vmem:[#allocation3 + $0x80] ss:$16 sps:$4 sm:$0xff]   ;;  %v2135_v22 = vld [vmem:[#allocation3 + $0x88] ss:$16 sps:$4 sm:$0xff]  }
  0x15   :  { %586 = vmatprep.subr.bf16.mxu0 %v2096_v10  ;;  %627 = vmatprep.subr.bf16.mxu1 %v2100_v11  ;;  %v2140_v23 = vld [vmem:[#allocation3 + $0x64] ss:$16 sps:$4 sm:$0xff]   ;;  %v2144_v24 = vld [vmem:[#allocation3 + $0x6c] ss:$16 sps:$4 sm:$0xff]   ;;  %v2150_v26 = vld [vmem:[#allocation3 + $0x60] ss:$16 sps:$4 sm:$0xff]  }
  0x16   :  { %167 = vmatprep.mubr.bf16.mxu0 %v2680_v0  ;;  %240 = vmatprep.mubr.bf16.mxu1 %v2680_v0  ;;  %v1808_v25 = vld [vmem:[%s2673_s0 + $0x10] sm:$0xff]   ;;  %v2154_v27 = vld [vmem:[#allocation3 + $0x68] ss:$16 sps:$4 sm:$0xff]   ;;  %v2159_v29 = vld [vmem:[#allocation3 + $0x4c] ss:$16 sps:$4 sm:$0xff]   ;;  %v54_v44 = vsub.s32 0, %v53_v42 }
  0x17   :  { %v2156_v28 = vld [vmem:[#allocation3 + $0x44] ss:$16 sps:$4 sm:$0xff]   ;;  %v2164_v30 = vld [vmem:[#allocation3 + $0x40] ss:$16 sps:$4 sm:$0xff]   ;;  %v2166_v31 = vld [vmem:[#allocation3 + $0x48] ss:$16 sps:$4 sm:$0xff]  }
  0x18   :  { %587 = vmatpush1.bf16.msra.mxu0 %v2102_v12  ;;  %628 = vmatpush1.bf16.msra.mxu1 %v2104_v13  ;;  %v1821_v32 = vld [vmem:[%s2673_s0 + $0x18] sm:$0xff]   ;;  %v2174_v33 = vld [vmem:[#allocation3 + $0x24] ss:$16 sps:$4 sm:$0xff]   ;;  %v2180_v35 = vld [vmem:[#allocation3 + $0x20] ss:$16 sps:$4 sm:$0xff]   ;;  %v66_v45 = vsub.s32 3, %v53_v42 }
  0x19   :  { %588 = vmatprep.subr.bf16.mxu0 %v2113_v15  ;;  %629 = vmatprep.subr.bf16.mxu1 %v2116_v16  ;;  %v2178_v34 = vld [vmem:[#allocation3 + $0x2c] ss:$16 sps:$4 sm:$0xff]   ;;  %v2182_v36 = vld [vmem:[#allocation3 + $0x28] ss:$16 sps:$4 sm:$0xff]   ;;  %v2184_v37 = vld [vmem:[#allocation3 + $0x4] ss:$16 sps:$4 sm:$0xff]  }
  0x1a   :  { %v2187_v38 = vld [vmem:[#allocation3 + $0xc] ss:$16 sps:$4 sm:$0xff]   ;;  %v2192_v39 = vld [vmem:[#allocation3] ss:$16 sps:$4 sm:$0xff]   ;;  %v2200_v40 = vld [vmem:[#allocation3 + $0x8] ss:$16 sps:$4 sm:$0xff]  }
  0x1b   :  { %1637 = vmatmul.mubr.msk.bf16.gmra.mxu0 %vm112_vm0, %v1795_v14  ;;  %1641 = vmatmul.mubr.msk.bf16.gmra.mxu1 %vm112_vm0, %v1795_v14  ;;  %v50_v46 = vld [vmem:[%s2676_s3] sm:$0xf]  ;;  %v58_v50 = vsub.s32 1, %v53_v42  ;;  %vm2029_vm1 = vmmov 0   ;;  %vm1614_vm2 = vcmask 31744  }
  0x1c   :  { %589 = vmatpush1.bf16.msra.mxu0 %v2119_v17  ;;  %177 = vmatprep.mubr.bf16.mxu0 %v2680_v0  ;;  %v2249_v49 = vrot.slane %v50_v46, %v62_v43  ;;  %v2253_v53 = vrot.slane %v50_v46, %v54_v44  ;;  %v2255_v54 = vrot.slane %v50_v46, %v66_v45 }
  0x1d   :  { %630 = vmatpush1.bf16.msra.mxu1 %v2121_v18  ;;  %590 = vmatprep.subr.bf16.mxu0 %v2125_v19  ;;  %v2257_v57 = vrot.slane %v50_v46, %v58_v50 }
  0x1e   :  { %631 = vmatprep.subr.bf16.mxu1 %v2128_v20  ;;  %250 = vmatprep.mubr.bf16.mxu1 %v2680_v0 }
  0x20   :  { %591 = vmatpush1.bf16.msra.mxu0 %v2132_v21 }
  0x21   :  { %632 = vmatpush1.bf16.msra.mxu1 %v2135_v22  ;;  %592 = vmatprep.subr.bf16.mxu0 %v2140_v23 }
  0x22   :  { %633 = vmatprep.subr.bf16.mxu1 %v2144_v24 }
  0x23   :  { %1638 = vmatmul.mubr.msk.bf16.gmra.mxu0 %vm112_vm0, %v1808_v25  ;;  %1642 = vmatmul.mubr.msk.bf16.gmra.mxu1 %vm112_vm0, %v1808_v25 }
  0x24   :  { %593 = vmatpush1.bf16.msra.mxu0 %v2150_v26  ;;  %187 = vmatprep.mubr.bf16.mxu0 %v2680_v0 }
  0x25   :  { %634 = vmatpush1.bf16.msra.mxu1 %v2154_v27  ;;  %594 = vmatprep.subr.bf16.mxu0 %v2156_v28 }
  0x26   :  { %635 = vmatprep.subr.bf16.mxu1 %v2159_v29  ;;  %260 = vmatprep.mubr.bf16.mxu1 %v2680_v0 }
  0x28   :  { %595 = vmatpush1.bf16.msra.mxu0 %v2164_v30 }
  0x29   :  { %636 = vmatpush1.bf16.msra.mxu1 %v2166_v31  ;;  %596 = vmatprep.subr.bf16.mxu0 %v2174_v33 }
  0x2a   :  { %637 = vmatprep.subr.bf16.mxu1 %v2178_v34 }
  0x2b   :  { %1639 = vmatmul.mubr.msk.bf16.gmra.mxu0 %vm112_vm0, %v1821_v32  ;;  %1643 = vmatmul.mubr.msk.bf16.gmra.mxu1 %vm112_vm0, %v1821_v32 }
  0x2c   :  { %597 = vmatpush1.bf16.msra.mxu0 %v2180_v35  ;;  %616 = vmatprep.mubr.bf16.mxu0 %v2680_v0 }
  0x2d   :  { %638 = vmatpush1.bf16.msra.mxu1 %v2182_v36  ;;  %598 = vmatprep.subr.bf16.mxu0 %v2184_v37 }
  0x2e   :  { %639 = vmatprep.subr.bf16.mxu1 %v2187_v38  ;;  %657 = vmatprep.mubr.bf16.mxu1 %v2680_v0 }
  0x30   :  { %599 = vmatpush1.bf16.msra.mxu0 %v2192_v39 }
  0x31   :  { %640 = vmatpush1.bf16.msra.mxu1 %v2200_v40  ;;  %700 = vmatprep.subr.bf16.mxu0 %v2085_v6 }
  0x32   :  { %741 = vmatprep.subr.bf16.mxu1 %v2087_v7 }
  0x33   :  { %617 = vmatmul.mubr.bf16.vlgmr.msra.gmra.mxu0 %v2680_v0 }
  0x34   :  { %658 = vmatmul.mubr.bf16.vlgmr.msra.gmra.mxu1 %v2680_v0  ;;  %701 = vmatpush1.bf16.msra.mxu0 %v2089_v8 }
  0x35   :  { %742 = vmatpush1.bf16.msra.mxu1 %v2092_v9  ;;  %702 = vmatprep.subr.bf16.mxu0 %v2096_v10 }
  0x36   :  { %743 = vmatprep.subr.bf16.mxu1 %v2100_v11  ;;  %732 = vmatprep.mubr.bf16.mxu0 %v2680_v0 }
  0x37   :  { %773 = vmatprep.mubr.bf16.mxu1 %v2680_v0 }
  0x38   :  { %703 = vmatpush1.bf16.msra.mxu0 %v2102_v12 }
  0x39   :  { %744 = vmatpush1.bf16.msra.mxu1 %v2104_v13  ;;  %704 = vmatprep.subr.bf16.mxu0 %v2113_v15 }
  0x3a   :  { %745 = vmatprep.subr.bf16.mxu1 %v2116_v16 }
  0x3c   :  { %705 = vmatpush1.bf16.msra.mxu0 %v2119_v17 }
  0x3d   :  { %746 = vmatpush1.bf16.msra.mxu1 %v2121_v18  ;;  %706 = vmatprep.subr.bf16.mxu0 %v2125_v19 }
  0x3e   :  { %747 = vmatprep.subr.bf16.mxu1 %v2128_v20 }
  0x40   :  { %707 = vmatpush1.bf16.msra.mxu0 %v2132_v21 }
  0x41   :  { %748 = vmatpush1.bf16.msra.mxu1 %v2135_v22  ;;  %708 = vmatprep.subr.bf16.mxu0 %v2140_v23 }
  0x42   :  { %749 = vmatprep.subr.bf16.mxu1 %v2144_v24 }
  0x44   :  { %709 = vmatpush1.bf16.msra.mxu0 %v2150_v26 }
  0x45   :  { %750 = vmatpush1.bf16.msra.mxu1 %v2154_v27  ;;  %710 = vmatprep.subr.bf16.mxu0 %v2156_v28 }
  0x46   :  { %751 = vmatprep.subr.bf16.mxu1 %v2159_v29 }
  0x48   :  { %711 = vmatpush1.bf16.msra.mxu0 %v2164_v30 }
  0x49   :  { %752 = vmatpush1.bf16.msra.mxu1 %v2166_v31  ;;  %712 = vmatprep.subr.bf16.mxu0 %v2174_v33 }
  0x4a   :  { %753 = vmatprep.subr.bf16.mxu1 %v2178_v34 }
  0x4c   :  { %713 = vmatpush1.bf16.msra.mxu0 %v2180_v35 }
  0x4d   :  { %754 = vmatpush1.bf16.msra.mxu1 %v2182_v36  ;;  %714 = vmatprep.subr.bf16.mxu0 %v2184_v37 }
  0x4e   :  { %755 = vmatprep.subr.bf16.mxu1 %v2187_v38 }
  0x50   :  { %715 = vmatpush1.bf16.msra.mxu0 %v2192_v39 }
  0x51   :  { %756 = vmatpush1.bf16.msra.mxu1 %v2200_v40  ;;  %816 = vmatprep.subr.bf16.mxu0 %v2085_v6 }
  0x52   :  { %857 = vmatprep.subr.bf16.mxu1 %v2087_v7 }
  0xd3   :  { %v159_v47 = vpop.f32.mrf.mxu0  ;;  %v2247_v48 = vpop.f32.mrf.mxu1 }
  0xd5   :  { %v161_v51 = vpop.f32.mrf.mxu0  ;;  %v2251_v52 = vpop.f32.mrf.mxu1 }
  0xd7   :  { %v163_v55 = vpop.f32.mrf.mxu0  ;;  %v236_v56 = vpop.f32.mrf.mxu1 }
  0xd8   :  { %v164_v58 = vadd.f32 %v163_v55, %v2253_v53  ;;  %v237_v59 = vadd.f32 %v236_v56, %v2249_v49 }
  0xd9   :  { %v165_v60 = vpop.f32.mrf.mxu0  ;;  %v238_v61 = vpop.f32.mrf.mxu1 }
  0xda   :  { %v166_v62 = vadd.f32 %v165_v60, %v2257_v57  ;;  %v239_v63 = vadd.f32 %v238_v61, %v2255_v54 }
  0xdb   :  { %v169_v1 = vpop.f32.mrf.mxu0  ;;  %v242_v2 = vpop.f32.mrf.mxu1 }
  0xdc   :  { %v2263_v3 = vpack.c.bf16 %v166_v62, %v164_v58  ;;  %v2265_v4 = vpack.c.bf16 %v239_v63, %v237_v59  ;;  %v170_v5 = vadd.f32 %v169_v1, %v2253_v53  ;;  %v243_v14 = vadd.f32 %v242_v2, %v2249_v49 }
  0xdd   :  { %v171_v25 = vpop.f32.mrf.mxu0  ;;  %v244_v32 = vpop.f32.mrf.mxu1 }
  0xde   :  { %v172_v41 = vadd.f32 %v171_v25, %v2257_v57  ;;  %v245_v42 = vadd.f32 %v244_v32, %v2255_v54 }
  0xdf   :  { %v173_v43 = vpop.f32.mrf.mxu0  ;;  %v246_v44 = vpop.f32.mrf.mxu1 }
  0xe0   :  { %v2271_v45 = vpack.c.bf16 %v172_v41, %v170_v5  ;;  %v2273_v46 = vpack.c.bf16 %v245_v42, %v243_v14  ;;  %v174_v50 = vadd.f32 %v173_v43, %v2253_v53  ;;  %v247_v55 = vadd.f32 %v246_v44, %v2249_v49 }
  0xe1   :  { %v175_v56 = vpop.f32.mrf.mxu0  ;;  %v248_v58 = vpop.f32.mrf.mxu1 }
  0xe2   :  { %v176_v59 = vadd.f32 %v175_v56, %v2257_v57  ;;  %v249_v60 = vadd.f32 %v248_v58, %v2255_v54 }
  0xe3   :  { %v179_v61 = vpop.f32.mrf.mxu0  ;;  %v252_v62 = vpop.f32.mrf.mxu1 }
  0xe4   :  { %v2279_v63 = vpack.c.bf16 %v176_v59, %v174_v50  ;;  %v2281_v1 = vpack.c.bf16 %v249_v60, %v247_v55  ;;  %v180_v2 = vadd.f32 %v179_v61, %v2253_v53  ;;  %v253_v5 = vadd.f32 %v252_v62, %v2249_v49 }
  0xe5   :  { %v181_v14 = vpop.f32.mrf.mxu0  ;;  %v254_v25 = vpop.f32.mrf.mxu1  ;;  %v162_v60 = vadd.f32 %v161_v51, %v2257_v57 }
  0xe6   :  { %2688 = vst [vmem:[#allocation6_spill] sm:$0xff] %v2281_v1  ;;  %v182_v32 = vadd.f32 %v181_v14, %v2257_v57  ;;  %v255_v41 = vadd.f32 %v254_v25, %v2255_v54  ;;  %v160_v14 = vadd.f32 %v159_v47, %v2253_v53 }
  0xe7   :  { %v183_v42 = vpop.f32.mrf.mxu0  ;;  %v256_v43 = vpop.f32.mrf.mxu1 }
  0xe8   :  { %v2287_v44 = vpack.c.bf16 %v182_v32, %v180_v2  ;;  %v2289_v56 = vpack.c.bf16 %v255_v41, %v253_v5  ;;  %v184_v50 = vadd.f32 %v183_v42, %v2253_v53  ;;  %v257_v55 = vadd.f32 %v256_v43, %v2249_v49 }
  0xe9   :  { %v185_v58 = vpop.f32.mrf.mxu0  ;;  %v258_v59 = vpop.f32.mrf.mxu1 }
  0xea   :  { %2689 = vst [vmem:[#allocation7_spill] sm:$0xff] %v2287_v44  ;;  %2690 = vst [vmem:[#allocation8_spill] sm:$0xff] %v2289_v56  ;;  %v186_v61 = vadd.f32 %v185_v58, %v2257_v57  ;;  %v259_v62 = vadd.f32 %v258_v59, %v2255_v54  ;;  %v1725_v56 = vpack.c.bf16 %v162_v60, %v160_v14 }
  0xeb   :  { %v189_v25 = vpop.f32.mrf.mxu0  ;;  %v262_v0 = vpop.f32.mrf.mxu1 }
  0xec   :  { %v2297_v2 = vpack.c.bf16 %v186_v61, %v184_v50  ;;  %v2299_v5 = vpack.c.bf16 %v259_v62, %v257_v55  ;;  %v190_v32 = vadd.f32 %v189_v25, %v2253_v53  ;;  %v263_v41 = vadd.f32 %v262_v0, %v2249_v49 }
  0xed   :  { %v191_v42 = vpop.f32.mrf.mxu0  ;;  %v264_v43 = vpop.f32.mrf.mxu1  ;;  %v420_v14 = vunpack.c.l.bf16 %v1725_v56 }
  0xee   :  { %v192_v51 = vadd.f32 %v191_v42, %v2257_v57  ;;  %v265_v58 = vadd.f32 %v264_v43, %v2255_v54 }
  0xef   :  { %v193_v59 = vpop.f32.mrf.mxu0  ;;  %v266_v44 = vpop.f32.mrf.mxu1 }
  0xf0   :  { %v2305_v47 = vpack.c.bf16 %v192_v51, %v190_v32  ;;  %v2307_v1 = vpack.c.bf16 %v265_v58, %v263_v41  ;;  %v194_v50 = vadd.f32 %v193_v59, %v2253_v53  ;;  %v267_v55 = vadd.f32 %v266_v44, %v2249_v49 }
  0xf1   :  { %v195_v61 = vpop.f32.mrf.mxu0  ;;  %v268_v62 = vpop.f32.mrf.mxu1  ;;  %v421_v41 = vunpack.c.h.bf16 %v1725_v56  ;;  %v233_v53 = vadd.f32 %v2247_v48, %v2249_v49  ;;  %v235_v44 = vadd.f32 %v2251_v52, %v2255_v54 }
  0xf2   :  { %2691 = vst [vmem:[#allocation9_spill] sm:$0xff] %v2307_v1  ;;  %v196_v0 = vadd.f32 %v195_v61, %v2257_v57  ;;  %v269_v60 = vadd.f32 %v268_v62, %v2255_v54 }
  0xf3   :  { %v618_v25 = vpop.f32.mrf.mxu0 }
  0xf4   :  { %v2313_v42 = vpack.c.bf16 %v196_v0, %v194_v50  ;;  %v2315_v43 = vpack.c.bf16 %v269_v60, %v267_v55  ;;  %v619_v32 = vadd.f32 %v618_v25, %v420_v14  ;;  %v659_v51 = vpop.f32.mrf.mxu1  ;;  %v1726_v0 = vpack.c.bf16 %v235_v44, %v233_v53 }
  0xf5   :  { %v620_v58 = vpop.f32.mrf.mxu0 }
  0xf6   :  { %2692 = vst [vmem:[#allocation10_spill] sm:$0xff] %v2313_v42  ;;  %2693 = vst [vmem:[#allocation11_spill] sm:$0xff] %v2315_v43  ;;  %v1692_v59 = vmul.f32 -1.442695, %v619_v32  ;;  %v621_v57 = vadd.f32 %v620_v58, %v421_v41  ;;  %v661_v61 = vpop.f32.mrf.mxu1  ;;  %v423_v14 = vunpack.c.h.bf16 %v1726_v0  ;;  %v422_v25 = vunpack.c.l.bf16 %v1726_v0 }
  0xf7   :  { %v622_v62 = vpop.f32.mrf.mxu0 }
  0xf8   :  { %1842 = vpow2.f32 %v1692_v59  ;;  %v1693_v1 = vmul.f32 -1.442695, %v621_v57  ;;  %v663_v50 = vpop.f32.mrf.mxu1  ;;  %v662_v56 = vadd.f32 %v661_v61, %v423_v14  ;;  %v660_v49 = vadd.f32 %v659_v51, %v422_v25 }
  0xf9   :  { %v623_v55 = vpop.f32.mrf.mxu0  ;;  %v696_v50 = vunpack.c.l.bf16 %v2263_v3  ;;  %v697_v14 = vunpack.c.h.bf16 %v2263_v3 }
  0xfa   :  { %1844 = vpow2.f32 %v1693_v1  ;;  %v664_v60 = vpop.f32.mrf.mxu1  ;;  %v1694_v43 = vmul.f32 -1.442695, %v662_v56 }
  0xfc   :  { %1846 = vpow2.f32 %v1694_v43 }
 0x105   :  { %v1843_v48 = vpop.eup %1842 }
 0x106   :  { %v669_v42 = vadd.f32 1.0, %v1843_v48 }
 0x107   :  { %v1845_v52 = vpop.eup %1844 }
 0x108   :  { %1848 = vrcp.f32 %v669_v42  ;;  %v675_v54 = vadd.f32 1.0, %v1845_v52  ;;  %v2694_v42 = vmov 0  }
 0x109   :  { %1850 = vtanh.f32 %v660_v49  ;;  %v1847_v32 = vpop.eup %1846 }
 0x10a   :  { %1852 = vrcp.f32 %v675_v54  ;;  %v682_v44 = vadd.f32 1.0, %v1847_v32 }
 0x10c   :  { %1854 = vrcp.f32 %v682_v44 }
 0x115   :  { %v1849_v41 = vpop.eup %1848 }
 0x116   :  { %v1851_v58 = vpop.eup %1850 }
 0x117   :  { %v1853_v53 = vpop.eup %1852  ;;  %v686_v59 = vmul.f32 %v1851_v58, %v1849_v41 }
 0x118   :  { %v685_v1 = vmul.f32 0.0, %v1853_v53  ;;  %v699_v53 = vunpack.c.h.bf16 %v2265_v4 }
 0x119   :  { %v1855_v51 = vpop.eup %1854 }
 0x11a   :  { %v2321_v57 = vadd.f32 %v686_v59, %v685_v1  ;;  %v698_v1 = vunpack.c.l.bf16 %v2265_v4 }
 0x11c   :  { %1856 = vtanh.f32 %v2321_v57 }
 0x129   :  { %v1857_v61 = vpop.eup %1856 }
 0x12a   :  { %v689_v62 = vmul.f32 %v1857_v61, %v1855_v51 }
 0x12c   :  { %v690_v43 = vpack.c.bf16 %v689_v62, %v689_v62 }
 0x12e   :  { %733 = vmatmul.mubr.bf16.vlgmr.msra.gmra.mxu0 %v690_v43  ;;  %774 = vmatmul.mubr.bf16.vlgmr.msra.gmra.mxu1 %v690_v43 }
 0x12f   :  { %817 = vmatpush1.bf16.msra.mxu0 %v2089_v8  ;;  %858 = vmatpush1.bf16.msra.mxu1 %v2092_v9 }
 0x130   :  { %818 = vmatprep.subr.bf16.mxu0 %v2096_v10  ;;  %859 = vmatprep.subr.bf16.mxu1 %v2100_v11 }
 0x131   :  { %848 = vmatprep.mubr.bf16.mxu0 %v2694_v42  ;;  %889 = vmatprep.mubr.bf16.mxu1 %v2694_v42 }
 0x133   :  { %819 = vmatpush1.bf16.msra.mxu0 %v2102_v12  ;;  %860 = vmatpush1.bf16.msra.mxu1 %v2104_v13 }
 0x134   :  { %820 = vmatprep.subr.bf16.mxu0 %v2113_v15  ;;  %861 = vmatprep.subr.bf16.mxu1 %v2116_v16 }
 0x137   :  { %821 = vmatpush1.bf16.msra.mxu0 %v2119_v17  ;;  %862 = vmatpush1.bf16.msra.mxu1 %v2121_v18 }
 0x138   :  { %822 = vmatprep.subr.bf16.mxu0 %v2125_v19  ;;  %863 = vmatprep.subr.bf16.mxu1 %v2128_v20 }
 0x13b   :  { %823 = vmatpush1.bf16.msra.mxu0 %v2132_v21  ;;  %864 = vmatpush1.bf16.msra.mxu1 %v2135_v22 }
 0x13c   :  { %824 = vmatprep.subr.bf16.mxu0 %v2140_v23  ;;  %865 = vmatprep.subr.bf16.mxu1 %v2144_v24 }
 0x13f   :  { %825 = vmatpush1.bf16.msra.mxu0 %v2150_v26  ;;  %866 = vmatpush1.bf16.msra.mxu1 %v2154_v27 }
 0x140   :  { %826 = vmatprep.subr.bf16.mxu0 %v2156_v28  ;;  %867 = vmatprep.subr.bf16.mxu1 %v2159_v29 }
 0x143   :  { %827 = vmatpush1.bf16.msra.mxu0 %v2164_v30  ;;  %868 = vmatpush1.bf16.msra.mxu1 %v2166_v31 }
 0x144   :  { %828 = vmatprep.subr.bf16.mxu0 %v2174_v33  ;;  %869 = vmatprep.subr.bf16.mxu1 %v2178_v34 }
 0x147   :  { %829 = vmatpush1.bf16.msra.mxu0 %v2180_v35  ;;  %870 = vmatpush1.bf16.msra.mxu1 %v2182_v36 }
 0x148   :  { %830 = vmatprep.subr.bf16.mxu0 %v2184_v37  ;;  %871 = vmatprep.subr.bf16.mxu1 %v2187_v38 }
 0x14b   :  { %831 = vmatpush1.bf16.msra.mxu0 %v2192_v39  ;;  %872 = vmatpush1.bf16.msra.mxu1 %v2200_v40 }
 0x14c   :  { %932 = vmatprep.subr.bf16.mxu0 %v2085_v6  ;;  %973 = vmatprep.subr.bf16.mxu1 %v2087_v7 }
 0x1ee   :  { %v734_v0 = vpop.f32.mrf.mxu0  ;;  %v775_v55 = vpop.f32.mrf.mxu1 }
 0x1ef   :  { %v735_v60 = vadd.f32 %v734_v0, %v696_v50  ;;  %v776_v59 = vadd.f32 %v775_v55, %v698_v1 }
 0x1f0   :  { %v736_v56 = vpop.f32.mrf.mxu0  ;;  %v777_v25 = vpop.f32.mrf.mxu1 }
 0x1f1   :  { %v1695_v48 = vmul.f32 -1.442695, %v735_v60  ;;  %v737_v49 = vadd.f32 %v736_v56, %v697_v14  ;;  %v778_v44 = vadd.f32 %v777_v25, %v699_v53  ;;  %v813_v53 = vunpack.c.h.bf16 %v2271_v45 }
 0x1f2   :  { %v738_v52 = vpop.f32.mrf.mxu0  ;;  %v779_v54 = vpop.f32.mrf.mxu1 }
 0x1f3   :  { %1858 = vpow2.f32 %v1695_v48  ;;  %v1696_v32 = vmul.f32 -1.442695, %v737_v49  ;;  %v1697_v51 = vmul.f32 -1.442695, %v778_v44 }
 0x1f4   :  { %v739_v41 = vpop.f32.mrf.mxu0  ;;  %v780_v58 = vpop.f32.mrf.mxu1 }
 0x1f5   :  { %1860 = vpow2.f32 %v1696_v32 }
 0x1f6   :  { %1862 = vtanh.f32 %v776_v59 }
 0x1f7   :  { %1864 = vpow2.f32 %v1697_v51 }
 0x200   :  { %v1859_v61 = vpop.eup %1858 }
 0x201   :  { %v785_v3 = vadd.f32 1.0, %v1859_v61 }
 0x202   :  { %v1861_v62 = vpop.eup %1860 }
 0x203   :  { %1866 = vrcp.f32 %v785_v3  ;;  %v791_v43 = vadd.f32 1.0, %v1861_v62  ;;  %v1863_v50 = vpop.eup %1862 }
 0x204   :  { %v1865_v0 = vpop.eup %1864 }
 0x205   :  { %1868 = vrcp.f32 %v791_v43  ;;  %v798_v48 = vadd.f32 1.0, %v1865_v0  ;;  %v815_v0 = vunpack.c.h.bf16 %v2273_v46 }
 0x207   :  { %1870 = vrcp.f32 %v798_v48 }
 0x210   :  { %v1867_v60 = vpop.eup %1866 }
 0x211   :  { %v802_v14 = vmul.f32 %v1867_v60, %v1863_v50 }
 0x212   :  { %v1869_v56 = vpop.eup %1868 }
 0x213   :  { %v801_v25 = vmul.f32 %v1869_v56, %v2321_v57  ;;  %v812_v57 = vunpack.c.l.bf16 %v2271_v45 }
 0x214   :  { %v1871_v4 = vpop.eup %1870 }
 0x215   :  { %v2363_v49 = vadd.f32 %v802_v14, %v801_v25  ;;  %v814_v14 = vunpack.c.l.bf16 %v2273_v46 }
 0x217   :  { %1872 = vtanh.f32 %v2363_v49 }
 0x224   :  { %v1873_v55 = vpop.eup %1872 }
 0x225   :  { %v805_v52 = vmul.f32 %v1873_v55, %v1871_v4 }
 0x227   :  { %v806_v54 = vpack.c.bf16 %v805_v52, %v805_v52 }
 0x229   :  { %849 = vmatmul.mubr.bf16.vlgmr.msra.gmra.mxu0 %v806_v54  ;;  %890 = vmatmul.mubr.bf16.vlgmr.msra.gmra.mxu1 %v806_v54 }
 0x22a   :  { %933 = vmatpush1.bf16.msra.mxu0 %v2089_v8  ;;  %974 = vmatpush1.bf16.msra.mxu1 %v2092_v9 }
 0x22b   :  { %934 = vmatprep.subr.bf16.mxu0 %v2096_v10  ;;  %975 = vmatprep.subr.bf16.mxu1 %v2100_v11 }
 0x22c   :  { %964 = vmatprep.mubr.bf16.mxu0 %v2694_v42  ;;  %1005 = vmatprep.mubr.bf16.mxu1 %v2694_v42 }
 0x22e   :  { %935 = vmatpush1.bf16.msra.mxu0 %v2102_v12  ;;  %976 = vmatpush1.bf16.msra.mxu1 %v2104_v13 }
 0x22f   :  { %936 = vmatprep.subr.bf16.mxu0 %v2113_v15  ;;  %977 = vmatprep.subr.bf16.mxu1 %v2116_v16 }
 0x232   :  { %937 = vmatpush1.bf16.msra.mxu0 %v2119_v17  ;;  %978 = vmatpush1.bf16.msra.mxu1 %v2121_v18 }
 0x233   :  { %938 = vmatprep.subr.bf16.mxu0 %v2125_v19  ;;  %979 = vmatprep.subr.bf16.mxu1 %v2128_v20 }
 0x236   :  { %939 = vmatpush1.bf16.msra.mxu0 %v2132_v21  ;;  %980 = vmatpush1.bf16.msra.mxu1 %v2135_v22 }
 0x237   :  { %940 = vmatprep.subr.bf16.mxu0 %v2140_v23  ;;  %981 = vmatprep.subr.bf16.mxu1 %v2144_v24 }
 0x23a   :  { %941 = vmatpush1.bf16.msra.mxu0 %v2150_v26  ;;  %982 = vmatpush1.bf16.msra.mxu1 %v2154_v27 }
 0x23b   :  { %942 = vmatprep.subr.bf16.mxu0 %v2156_v28  ;;  %983 = vmatprep.subr.bf16.mxu1 %v2159_v29 }
 0x23e   :  { %943 = vmatpush1.bf16.msra.mxu0 %v2164_v30  ;;  %984 = vmatpush1.bf16.msra.mxu1 %v2166_v31 }
 0x23f   :  { %944 = vmatprep.subr.bf16.mxu0 %v2174_v33  ;;  %985 = vmatprep.subr.bf16.mxu1 %v2178_v34 }
 0x242   :  { %945 = vmatpush1.bf16.msra.mxu0 %v2180_v35  ;;  %986 = vmatpush1.bf16.msra.mxu1 %v2182_v36 }
 0x243   :  { %946 = vmatprep.subr.bf16.mxu0 %v2184_v37  ;;  %987 = vmatprep.subr.bf16.mxu1 %v2187_v38 }
 0x246   :  { %947 = vmatpush1.bf16.msra.mxu0 %v2192_v39  ;;  %988 = vmatpush1.bf16.msra.mxu1 %v2200_v40 }
 0x247   :  { %1048 = vmatprep.subr.bf16.mxu0 %v2085_v6  ;;  %1089 = vmatprep.subr.bf16.mxu1 %v2087_v7 }
 0x2e9   :  { %v850_v32 = vpop.f32.mrf.mxu0  ;;  %v891_v41 = vpop.f32.mrf.mxu1 }
 0x2ea   :  { %v851_v58 = vadd.f32 %v850_v32, %v812_v57  ;;  %v892_v56 = vadd.f32 %v891_v41, %v814_v14 }
 0x2eb   :  { %v852_v44 = vpop.f32.mrf.mxu0  ;;  %v893_v1 = vpop.f32.mrf.mxu1 }
 0x2ec   :  { %v1698_v59 = vmul.f32 -1.442695, %v851_v58  ;;  %v853_v51 = vadd.f32 %v852_v44, %v813_v53  ;;  %v894_v60 = vadd.f32 %v893_v1, %v815_v0 }
 0x2ed   :  { %v854_v61 = vpop.f32.mrf.mxu0  ;;  %v895_v3 = vpop.f32.mrf.mxu1 }
 0x2ee   :  { %1874 = vpow2.f32 %v1698_v59  ;;  %v1699_v62 = vmul.f32 -1.442695, %v853_v51  ;;  %v1700_v48 = vmul.f32 -1.442695, %v894_v60 }
 0x2ef   :  { %v855_v43 = vpop.f32.mrf.mxu0  ;;  %v896_v50 = vpop.f32.mrf.mxu1 }
 0x2f0   :  { %1876 = vpow2.f32 %v1699_v62 }
 0x2f1   :  { %1878 = vtanh.f32 %v892_v56 }
 0x2f2   :  { %1880 = vpow2.f32 %v1700_v48 }
 0x2fb   :  { %v1875_v25 = vpop.eup %1874 }
 0x2fc   :  { %v901_v45 = vadd.f32 1.0, %v1875_v25 }
 0x2fd   :  { %v1877_v4 = vpop.eup %1876 }
 0x2fe   :  { %1882 = vrcp.f32 %v901_v45  ;;  %v907_v55 = vadd.f32 1.0, %v1877_v4  ;;  %v1879_v52 = vpop.eup %1878 }
 0x2ff   :  { %v1881_v54 = vpop.eup %1880 }
 0x300   :  { %1884 = vrcp.f32 %v907_v55  ;;  %v914_v53 = vadd.f32 1.0, %v1881_v54 }
 0x302   :  { %1886 = vrcp.f32 %v914_v53  ;;  %v2450_v53 = vld [vmem:[#allocation3 + $0xe0] ss:$16 sps:$4 sm:$0xff]  }
 0x30b   :  { %v1883_v57 = vpop.eup %1882 }
 0x30c   :  { %v918_v32 = vmul.f32 %v1883_v57, %v1879_v52 }
 0x30d   :  { %v1885_v58 = vpop.eup %1884 }
 0x30e   :  { %v917_v44 = vmul.f32 %v1885_v58, %v2363_v49 }
 0x30f   :  { %v1887_v46 = vpop.eup %1886 }
 0x310   :  { %v2405_v1 = vadd.f32 %v918_v32, %v917_v44  ;;  %v2453_v44 = vld [vmem:[#allocation3 + $0xe8] ss:$16 sps:$4 sm:$0xff]  }
 0x312   :  { %1888 = vtanh.f32 %v2405_v1 }
 0x31f   :  { %v1889_v41 = vpop.eup %1888 }
 0x320   :  { %v921_v59 = vmul.f32 %v1889_v41, %v1887_v46  ;;  %v2459_v46 = vld [vmem:[#allocation3 + $0xcc] ss:$16 sps:$4 sm:$0xff]   ;;  %v2464_v41 = vld [vmem:[#allocation3 + $0xc0] ss:$16 sps:$4 sm:$0xff]  }
 0x322   :  { %v922_v51 = vpack.c.bf16 %v921_v59, %v921_v59  ;;  %v2467_v59 = vld [vmem:[#allocation3 + $0xc8] ss:$16 sps:$4 sm:$0xff]  }
 0x324   :  { %965 = vmatmul.mubr.bf16.vlgmr.msra.gmra.mxu0 %v922_v51  ;;  %1006 = vmatmul.mubr.bf16.vlgmr.msra.gmra.mxu1 %v922_v51  ;;  %v2470_v51 = vld [vmem:[#allocation3 + $0xa4] ss:$16 sps:$4 sm:$0xff]  }
 0x325   :  { %1049 = vmatpush1.bf16.msra.mxu0 %v2089_v8  ;;  %1090 = vmatpush1.bf16.msra.mxu1 %v2092_v9  ;;  %v928_v8 = vunpack.c.l.bf16 %v2279_v63 }
 0x326   :  { %1050 = vmatprep.subr.bf16.mxu0 %v2096_v10  ;;  %1091 = vmatprep.subr.bf16.mxu1 %v2100_v11 }
 0x327   :  { %1080 = vmatprep.mubr.bf16.mxu0 %v2694_v42  ;;  %1121 = vmatprep.mubr.bf16.mxu1 %v2694_v42 }
 0x329   :  { %1051 = vmatpush1.bf16.msra.mxu0 %v2102_v12  ;;  %1092 = vmatpush1.bf16.msra.mxu1 %v2104_v13  ;;  %v929_v12 = vunpack.c.h.bf16 %v2279_v63 }
 0x32a   :  { %1052 = vmatprep.subr.bf16.mxu0 %v2113_v15  ;;  %1093 = vmatprep.subr.bf16.mxu1 %v2116_v16 }
 0x32d   :  { %1053 = vmatpush1.bf16.msra.mxu0 %v2119_v17  ;;  %1094 = vmatpush1.bf16.msra.mxu1 %v2121_v18 }
 0x32e   :  { %1054 = vmatprep.subr.bf16.mxu0 %v2125_v19  ;;  %1095 = vmatprep.subr.bf16.mxu1 %v2128_v20 }
 0x331   :  { %1055 = vmatpush1.bf16.msra.mxu0 %v2132_v21  ;;  %1096 = vmatpush1.bf16.msra.mxu1 %v2135_v22 }
 0x332   :  { %1056 = vmatprep.subr.bf16.mxu0 %v2140_v23  ;;  %1097 = vmatprep.subr.bf16.mxu1 %v2144_v24 }
 0x335   :  { %1057 = vmatpush1.bf16.msra.mxu0 %v2150_v26  ;;  %1098 = vmatpush1.bf16.msra.mxu1 %v2154_v27 }
 0x336   :  { %1058 = vmatprep.subr.bf16.mxu0 %v2156_v28  ;;  %1099 = vmatprep.subr.bf16.mxu1 %v2159_v29 }
 0x339   :  { %1059 = vmatpush1.bf16.msra.mxu0 %v2164_v30  ;;  %1100 = vmatpush1.bf16.msra.mxu1 %v2166_v31 }
 0x33a   :  { %1060 = vmatprep.subr.bf16.mxu0 %v2174_v33  ;;  %1101 = vmatprep.subr.bf16.mxu1 %v2178_v34 }
 0x33d   :  { %1061 = vmatpush1.bf16.msra.mxu0 %v2180_v35  ;;  %1102 = vmatpush1.bf16.msra.mxu1 %v2182_v36 }
 0x33e   :  { %1062 = vmatprep.subr.bf16.mxu0 %v2184_v37  ;;  %1103 = vmatprep.subr.bf16.mxu1 %v2187_v38 }
 0x341   :  { %1063 = vmatpush1.bf16.msra.mxu0 %v2192_v39  ;;  %1104 = vmatpush1.bf16.msra.mxu1 %v2200_v40 }
 0x342   :  { %1164 = vmatprep.subr.bf16.mxu0 %v2085_v6  ;;  %1205 = vmatprep.subr.bf16.mxu1 %v2087_v7  ;;  %v2695_v6 = vld [vmem:[#allocation6_spill] sm:$0xff] }
 0x343   :  { %v931_v7 = vunpack.c.h.bf16 %v2695_v6  ;;  %v930_v3 = vunpack.c.l.bf16 %v2695_v6 }
 0x3e4   :  { %v966_v9 = vpop.f32.mrf.mxu0  ;;  %v1007_v10 = vpop.f32.mrf.mxu1 }
 0x3e5   :  { %v967_v11 = vadd.f32 %v966_v9, %v928_v8  ;;  %v1008_v62 = vadd.f32 %v1007_v10, %v930_v3  ;;  %v2473_v8 = vld [vmem:[#allocation3 + $0xac] ss:$16 sps:$4 sm:$0xff]   ;;  %v2476_v9 = vld [vmem:[#allocation3 + $0xa0] ss:$16 sps:$4 sm:$0xff]   ;;  %v2479_v10 = vld [vmem:[#allocation3 + $0xa8] ss:$16 sps:$4 sm:$0xff]  }
 0x3e6   :  { %v968_v13 = vpop.f32.mrf.mxu0  ;;  %v1009_v15 = vpop.f32.mrf.mxu1 }
 0x3e7   :  { %v1701_v16 = vmul.f32 -1.442695, %v967_v11  ;;  %v969_v17 = vadd.f32 %v968_v13, %v929_v12  ;;  %v1010_v61 = vadd.f32 %v1009_v15, %v931_v7  ;;  %v2482_v11 = vld [vmem:[#allocation3 + $0x84] ss:$16 sps:$4 sm:$0xff]   ;;  %v2485_v12 = vld [vmem:[#allocation3 + $0x8c] ss:$16 sps:$4 sm:$0xff]  }
 0x3e8   :  { %v970_v18 = vpop.f32.mrf.mxu0  ;;  %v1011_v19 = vpop.f32.mrf.mxu1  ;;  %v2488_v13 = vld [vmem:[#allocation3 + $0x80] ss:$16 sps:$4 sm:$0xff]  }
 0x3e9   :  { %1890 = vpow2.f32 %v1701_v16  ;;  %v1702_v20 = vmul.f32 -1.442695, %v969_v17  ;;  %v1703_v43 = vmul.f32 -1.442695, %v1010_v61  ;;  %v2697_v15 = vld [vmem:[#allocation8_spill] sm:$0xff] }
 0x3ea   :  { %v971_v21 = vpop.f32.mrf.mxu0  ;;  %v1012_v49 = vpop.f32.mrf.mxu1  ;;  %v1047_v16 = vunpack.c.h.bf16 %v2697_v15  ;;  %v1046_v18 = vunpack.c.l.bf16 %v2697_v15 }
 0x3eb   :  { %1892 = vpow2.f32 %v1702_v20 }
 0x3ec   :  { %1894 = vtanh.f32 %v1008_v62 }
 0x3ed   :  { %1896 = vpow2.f32 %v1703_v43 }
 0x3f6   :  { %v1891_v50 = vpop.eup %1890 }
 0x3f7   :  { %v1017_v63 = vadd.f32 1.0, %v1891_v50 }
 0x3f8   :  { %v1893_v0 = vpop.eup %1892 }
 0x3f9   :  { %1898 = vrcp.f32 %v1017_v63  ;;  %v1023_v60 = vadd.f32 1.0, %v1893_v0  ;;  %v1895_v14 = vpop.eup %1894 }
 0x3fa   :  { %v1897_v56 = vpop.eup %1896 }
 0x3fb   :  { %1900 = vrcp.f32 %v1023_v60  ;;  %v1030_v4 = vadd.f32 1.0, %v1897_v56 }
 0x3fd   :  { %1902 = vrcp.f32 %v1030_v4  ;;  %v2540_v4 = vld [vmem:[#allocation3 + $0x64] ss:$16 sps:$4 sm:$0xff]  }
 0x406   :  { %v1899_v48 = vpop.eup %1898 }
 0x407   :  { %v1034_v25 = vmul.f32 %v1899_v48, %v1895_v14 }
 0x408   :  { %v1901_v45 = vpop.eup %1900 }
 0x409   :  { %v1033_v55 = vmul.f32 %v1901_v45, %v2405_v1  ;;  %v2456_v1 = vld [vmem:[#allocation3 + $0xc4] ss:$16 sps:$4 sm:$0xff]   ;;  %v2537_v45 = vld [vmem:[#allocation3 + $0x88] ss:$16 sps:$4 sm:$0xff]  }
 0x40a   :  { %v1903_v54 = vpop.eup %1902 }
 0x40b   :  { %v2447_v52 = vadd.f32 %v1034_v25, %v1033_v55  ;;  %v2543_v55 = vld [vmem:[#allocation3 + $0x6c] ss:$16 sps:$4 sm:$0xff]  }
 0x40d   :  { %1904 = vtanh.f32 %v2447_v52 }
 0x41a   :  { %v1905_v57 = vpop.eup %1904 }
 0x41b   :  { %v1037_v32 = vmul.f32 %v1905_v57, %v1903_v54  ;;  %v2549_v54 = vld [vmem:[#allocation3 + $0x68] ss:$16 sps:$4 sm:$0xff]   ;;  %v2552_v57 = vld [vmem:[#allocation3 + $0x44] ss:$16 sps:$4 sm:$0xff]  }
 0x41d   :  { %v1038_v58 = vpack.c.bf16 %v1037_v32, %v1037_v32  ;;  %v2555_v32 = vld [vmem:[#allocation3 + $0x4c] ss:$16 sps:$4 sm:$0xff]  }
 0x41f   :  { %1081 = vmatmul.mubr.bf16.vlgmr.msra.gmra.mxu0 %v1038_v58  ;;  %1122 = vmatmul.mubr.bf16.vlgmr.msra.gmra.mxu1 %v1038_v58  ;;  %v2558_v58 = vld [vmem:[#allocation3 + $0x40] ss:$16 sps:$4 sm:$0xff]  }
 0x420   :  { %1165 = vmatpush1.bf16.msra.mxu0 %v2450_v53  ;;  %1206 = vmatpush1.bf16.msra.mxu1 %v2453_v44 }
 0x421   :  { %1166 = vmatprep.subr.bf16.mxu0 %v2456_v1  ;;  %1207 = vmatprep.subr.bf16.mxu1 %v2459_v46 }
 0x422   :  { %1196 = vmatprep.mubr.bf16.mxu0 %v2694_v42  ;;  %1237 = vmatprep.mubr.bf16.mxu1 %v2694_v42 }
 0x424   :  { %1167 = vmatpush1.bf16.msra.mxu0 %v2464_v41  ;;  %1208 = vmatpush1.bf16.msra.mxu1 %v2467_v59 }
 0x425   :  { %1168 = vmatprep.subr.bf16.mxu0 %v2470_v51  ;;  %1209 = vmatprep.subr.bf16.mxu1 %v2473_v8 }
 0x428   :  { %1169 = vmatpush1.bf16.msra.mxu0 %v2476_v9  ;;  %1210 = vmatpush1.bf16.msra.mxu1 %v2479_v10 }
 0x429   :  { %1170 = vmatprep.subr.bf16.mxu0 %v2482_v11  ;;  %1211 = vmatprep.subr.bf16.mxu1 %v2485_v12 }
 0x42c   :  { %1171 = vmatpush1.bf16.msra.mxu0 %v2488_v13  ;;  %1212 = vmatpush1.bf16.msra.mxu1 %v2135_v22  ;;  %v2508_v22 = vld [vmem:[#allocation3 + $0xe4] ss:$16 sps:$4 sm:$0xff]  }
 0x42d   :  { %1172 = vmatprep.subr.bf16.mxu0 %v2140_v23  ;;  %1213 = vmatprep.subr.bf16.mxu1 %v2144_v24  ;;  %v2511_v23 = vld [vmem:[#allocation3 + $0xec] ss:$16 sps:$4 sm:$0xff]  }
 0x42e   :  { %v2696_v24 = vld [vmem:[#allocation7_spill] sm:$0xff] }
 0x430   :  { %1173 = vmatpush1.bf16.msra.mxu0 %v2150_v26  ;;  %1214 = vmatpush1.bf16.msra.mxu1 %v2154_v27  ;;  %v1044_v26 = vunpack.c.l.bf16 %v2696_v24 }
 0x431   :  { %1174 = vmatprep.subr.bf16.mxu0 %v2156_v28  ;;  %1215 = vmatprep.subr.bf16.mxu1 %v2159_v29 }
 0x434   :  { %1175 = vmatpush1.bf16.msra.mxu0 %v2164_v30  ;;  %1216 = vmatpush1.bf16.msra.mxu1 %v2166_v31  ;;  %v1045_v30 = vunpack.c.h.bf16 %v2696_v24  ;;  %v2561_v24 = vld [vmem:[#allocation3 + $0x48] ss:$16 sps:$4 sm:$0xff]  }
 0x435   :  { %1176 = vmatprep.subr.bf16.mxu0 %v2174_v33  ;;  %1217 = vmatprep.subr.bf16.mxu1 %v2178_v34 }
 0x438   :  { %1177 = vmatpush1.bf16.msra.mxu0 %v2180_v35  ;;  %1218 = vmatpush1.bf16.msra.mxu1 %v2182_v36 }
 0x439   :  { %1178 = vmatprep.subr.bf16.mxu0 %v2184_v37  ;;  %1219 = vmatprep.subr.bf16.mxu1 %v2187_v38 }
 0x43c   :  { %1179 = vmatpush1.bf16.msra.mxu0 %v2192_v39  ;;  %1220 = vmatpush1.bf16.msra.mxu1 %v2200_v40 }
 0x43d   :  { %1280 = vmatprep.subr.bf16.mxu0 %v2508_v22  ;;  %1321 = vmatprep.subr.bf16.mxu1 %v2511_v23 }
 0x4df   :  { %v1082_v27 = vpop.f32.mrf.mxu0  ;;  %v1123_v28 = vpop.f32.mrf.mxu1 }
 0x4e0   :  { %v1083_v29 = vadd.f32 %v1082_v27, %v1044_v26  ;;  %v1124_v19 = vadd.f32 %v1123_v28, %v1046_v18  ;;  %v2564_v26 = vld [vmem:[#allocation3 + $0x24] ss:$16 sps:$4 sm:$0xff]   ;;  %v2567_v27 = vld [vmem:[#allocation3 + $0x2c] ss:$16 sps:$4 sm:$0xff]   ;;  %v2570_v28 = vld [vmem:[#allocation3 + $0x20] ss:$16 sps:$4 sm:$0xff]  }
 0x4e1   :  { %v1084_v31 = vpop.f32.mrf.mxu0  ;;  %v1125_v33 = vpop.f32.mrf.mxu1 }
 0x4e2   :  { %v1704_v34 = vmul.f32 -1.442695, %v1083_v29  ;;  %v1085_v35 = vadd.f32 %v1084_v31, %v1045_v30  ;;  %v1126_v17 = vadd.f32 %v1125_v33, %v1047_v16  ;;  %v2573_v29 = vld [vmem:[#allocation3 + $0x28] ss:$16 sps:$4 sm:$0xff]   ;;  %v2576_v30 = vld [vmem:[#allocation3 + $0x4] ss:$16 sps:$4 sm:$0xff]  }
 0x4e3   :  { %v1086_v36 = vpop.f32.mrf.mxu0  ;;  %v1127_v37 = vpop.f32.mrf.mxu1  ;;  %v2579_v31 = vld [vmem:[#allocation3 + $0xc] ss:$16 sps:$4 sm:$0xff]   ;;  %v2582_v33 = vld [vmem:[#allocation3] ss:$16 sps:$4 sm:$0xff]  }
 0x4e4   :  { %1906 = vpow2.f32 %v1704_v34  ;;  %v1705_v38 = vmul.f32 -1.442695, %v1085_v35  ;;  %v1706_v20 = vmul.f32 -1.442695, %v1126_v17  ;;  %v2585_v34 = vld [vmem:[#allocation3 + $0x8] ss:$16 sps:$4 sm:$0xff]   ;;  %v1160_v35 = vunpack.c.l.bf16 %v2297_v2 }
 0x4e5   :  { %v1087_v39 = vpop.f32.mrf.mxu0  ;;  %v1128_v40 = vpop.f32.mrf.mxu1 }
 0x4e6   :  { %1908 = vpow2.f32 %v1705_v38  ;;  %v1161_v39 = vunpack.c.h.bf16 %v2297_v2 }
 0x4e7   :  { %1910 = vtanh.f32 %v1124_v19 }
 0x4e8   :  { %1912 = vpow2.f32 %v1706_v20 }
 0x4f1   :  { %v1907_v21 = vpop.eup %1906 }
 0x4f2   :  { %v1133_v49 = vadd.f32 1.0, %v1907_v21 }
 0x4f3   :  { %v1909_v6 = vpop.eup %1908 }
 0x4f4   :  { %1914 = vrcp.f32 %v1133_v49  ;;  %v1139_v7 = vadd.f32 1.0, %v1909_v6  ;;  %v1911_v61 = vpop.eup %1910  ;;  %v1162_v6 = vunpack.c.l.bf16 %v2299_v5 }
 0x4f5   :  { %v1913_v3 = vpop.eup %1912 }
 0x4f6   :  { %1916 = vrcp.f32 %v1139_v7  ;;  %v1146_v63 = vadd.f32 1.0, %v1913_v3 }
 0x4f8   :  { %1918 = vrcp.f32 %v1146_v63 }
 0x501   :  { %v1915_v62 = vpop.eup %1914 }
 0x502   :  { %v1150_v43 = vmul.f32 %v1915_v62, %v1911_v61 }
 0x503   :  { %v1917_v50 = vpop.eup %1916 }
 0x504   :  { %v1149_v0 = vmul.f32 %v1917_v50, %v2447_v52  ;;  %v2546_v52 = vld [vmem:[#allocation3 + $0x60] ss:$16 sps:$4 sm:$0xff]  }
 0x505   :  { %v1919_v14 = vpop.eup %1918 }
 0x506   :  { %v2519_v60 = vadd.f32 %v1150_v43, %v1149_v0 }
 0x508   :  { %1920 = vtanh.f32 %v2519_v60 }
 0x515   :  { %v1921_v56 = vpop.eup %1920 }
 0x516   :  { %v1153_v48 = vmul.f32 %v1921_v56, %v1919_v14 }
 0x518   :  { %v1154_v25 = vpack.c.bf16 %v1153_v48, %v1153_v48 }
 0x51a   :  { %1197 = vmatmul.mubr.bf16.vlgmr.msra.gmra.mxu0 %v1154_v25  ;;  %1238 = vmatmul.mubr.bf16.vlgmr.msra.gmra.mxu1 %v1154_v25 }
 0x51b   :  { %1281 = vmatpush1.bf16.msra.mxu0 %v2450_v53  ;;  %1322 = vmatpush1.bf16.msra.mxu1 %v2453_v44 }
 0x51c   :  { %1282 = vmatprep.subr.bf16.mxu0 %v2456_v1  ;;  %1323 = vmatprep.subr.bf16.mxu1 %v2459_v46 }
 0x51d   :  { %1312 = vmatprep.mubr.bf16.mxu0 %v2694_v42  ;;  %1353 = vmatprep.mubr.bf16.mxu1 %v2694_v42 }
 0x51f   :  { %1283 = vmatpush1.bf16.msra.mxu0 %v2464_v41  ;;  %1324 = vmatpush1.bf16.msra.mxu1 %v2467_v59 }
 0x520   :  { %1284 = vmatprep.subr.bf16.mxu0 %v2470_v51  ;;  %1325 = vmatprep.subr.bf16.mxu1 %v2473_v8 }
 0x523   :  { %1285 = vmatpush1.bf16.msra.mxu0 %v2476_v9  ;;  %1326 = vmatpush1.bf16.msra.mxu1 %v2479_v10 }
 0x524   :  { %1286 = vmatprep.subr.bf16.mxu0 %v2482_v11  ;;  %1327 = vmatprep.subr.bf16.mxu1 %v2485_v12 }
 0x527   :  { %1287 = vmatpush1.bf16.msra.mxu0 %v2488_v13  ;;  %1328 = vmatpush1.bf16.msra.mxu1 %v2537_v45 }
 0x528   :  { %1288 = vmatprep.subr.bf16.mxu0 %v2540_v4  ;;  %1329 = vmatprep.subr.bf16.mxu1 %v2543_v55 }
 0x52b   :  { %1289 = vmatpush1.bf16.msra.mxu0 %v2546_v52  ;;  %1330 = vmatpush1.bf16.msra.mxu1 %v2549_v54 }
 0x52c   :  { %1290 = vmatprep.subr.bf16.mxu0 %v2552_v57  ;;  %1331 = vmatprep.subr.bf16.mxu1 %v2555_v32 }
 0x52f   :  { %1291 = vmatpush1.bf16.msra.mxu0 %v2558_v58  ;;  %1332 = vmatpush1.bf16.msra.mxu1 %v2561_v24 }
 0x530   :  { %1292 = vmatprep.subr.bf16.mxu0 %v2564_v26  ;;  %1333 = vmatprep.subr.bf16.mxu1 %v2567_v27 }
 0x533   :  { %1293 = vmatpush1.bf16.msra.mxu0 %v2570_v28  ;;  %1334 = vmatpush1.bf16.msra.mxu1 %v2573_v29 }
 0x534   :  { %1294 = vmatprep.subr.bf16.mxu0 %v2576_v30  ;;  %1335 = vmatprep.subr.bf16.mxu1 %v2579_v31 }
 0x537   :  { %1295 = vmatpush1.bf16.msra.mxu0 %v2582_v33  ;;  %1336 = vmatpush1.bf16.msra.mxu1 %v2585_v34 }
 0x538   :  { %1396 = vmatprep.subr.bf16.mxu0 %v2508_v22  ;;  %1437 = vmatprep.subr.bf16.mxu1 %v2511_v23  ;;  %v1163_v22 = vunpack.c.h.bf16 %v2299_v5 }
 0x5da   :  { %v1198_v36 = vpop.f32.mrf.mxu0  ;;  %v1239_v37 = vpop.f32.mrf.mxu1 }
 0x5db   :  { %v1199_v38 = vadd.f32 %v1198_v36, %v1160_v35  ;;  %v1240_v7 = vadd.f32 %v1239_v37, %v1162_v6  ;;  %v2699_v6 = vld [vmem:[#allocation10_spill] sm:$0xff] }
 0x5dc   :  { %v1200_v40 = vpop.f32.mrf.mxu0  ;;  %v1241_v15 = vpop.f32.mrf.mxu1 }
 0x5dd   :  { %v1707_v16 = vmul.f32 -1.442695, %v1199_v38  ;;  %v1201_v17 = vadd.f32 %v1200_v40, %v1161_v39  ;;  %v1242_v23 = vadd.f32 %v1241_v15, %v1163_v22  ;;  %v1840_v22 = vld [vmem:[%s2677_s4 + $0x8] sm:$0xff]  }
 0x5de   :  { %v1202_v18 = vpop.f32.mrf.mxu0  ;;  %v1243_v19 = vpop.f32.mrf.mxu1 }
 0x5df   :  { %1922 = vpow2.f32 %v1707_v16  ;;  %v1708_v20 = vmul.f32 -1.442695, %v1201_v17  ;;  %v1709_v61 = vmul.f32 -1.442695, %v1242_v23  ;;  %v1834_v16 = vld [vmem:[%s2677_s4 + $0x38] sm:$0xff]   ;;  %v2028_v17 = vmov 0.0  }
 0x5e0   :  { %v1203_v21 = vpop.f32.mrf.mxu0  ;;  %v1244_v49 = vpop.f32.mrf.mxu1  ;;  %v1835_v18 = vld [vmem:[%s2677_s4 + $0x30] sm:$0xff]   ;;  %v1836_v19 = vld [vmem:[%s2677_s4 + $0x28] sm:$0xff]   ;;  %v1841_v23 = vld [vmem:[%s2677_s4] sm:$0xff]  }
 0x5e1   :  { %1924 = vpow2.f32 %v1708_v20  ;;  %v1837_v20 = vld [vmem:[%s2677_s4 + $0x20] sm:$0xff]   ;;  %v1838_v21 = vld [vmem:[%s2677_s4 + $0x18] sm:$0xff]   ;;  %v1839_v49 = vld [vmem:[%s2677_s4 + $0x10] sm:$0xff]  }
 0x5e2   :  { %1926 = vtanh.f32 %v1240_v7  ;;  %v1392_v7 = vunpack.c.l.bf16 %v2699_v6 }
 0x5e3   :  { %1928 = vpow2.f32 %v1709_v61 }
 0x5ec   :  { %v1923_v3 = vpop.eup %1922 }
 0x5ed   :  { %v1249_v2 = vadd.f32 1.0, %v1923_v3 }
 0x5ee   :  { %v1925_v62 = vpop.eup %1924 }
 0x5ef   :  { %1930 = vrcp.f32 %v1249_v2  ;;  %v1255_v43 = vadd.f32 1.0, %v1925_v62  ;;  %v1927_v50 = vpop.eup %1926  ;;  %v1393_v62 = vunpack.c.h.bf16 %v2699_v6 }
 0x5f0   :  { %v1929_v63 = vpop.eup %1928 }
 0x5f1   :  { %1932 = vrcp.f32 %v1255_v43  ;;  %v1262_v48 = vadd.f32 1.0, %v1929_v63 }
 0x5f3   :  { %1934 = vrcp.f32 %v1262_v48 }
 0x5fc   :  { %v1931_v0 = vpop.eup %1930 }
 0x5fd   :  { %v1266_v14 = vmul.f32 %v1931_v0, %v1927_v50 }
 0x5fe   :  { %v1933_v56 = vpop.eup %1932 }
 0x5ff   :  { %v1265_v25 = vmul.f32 %v1933_v56, %v2519_v60  ;;  %v2698_v60 = vld [vmem:[#allocation9_spill] sm:$0xff] }
 0x600   :  { %v1935_v5 = vpop.eup %1934 }
 0x601   :  { %v2595_v35 = vadd.f32 %v1266_v14, %v1265_v25 }
 0x603   :  { %1936 = vtanh.f32 %v2595_v35 }
 0x610   :  { %v1937_v36 = vpop.eup %1936 }
 0x611   :  { %v1269_v37 = vmul.f32 %v1937_v36, %v1935_v5  ;;  %v2700_v5 = vld [vmem:[#allocation11_spill] sm:$0xff] }
 0x612   :  { %v1395_v36 = vunpack.c.h.bf16 %v2700_v5 }
 0x613   :  { %v1270_v38 = vpack.c.bf16 %v1269_v37, %v1269_v37 }
 0x615   :  { %1313 = vmatmul.mubr.bf16.vlgmr.msra.gmra.mxu0 %v1270_v38  ;;  %1354 = vmatmul.mubr.bf16.vlgmr.msra.gmra.mxu1 %v1270_v38  ;;  %v1394_v38 = vunpack.c.l.bf16 %v2700_v5 }
 0x616   :  { %1397 = vmatpush1.bf16.msra.mxu0 %v2450_v53  ;;  %1438 = vmatpush1.bf16.msra.mxu1 %v2453_v44 }
 0x617   :  { %1398 = vmatprep.subr.bf16.mxu0 %v2456_v1  ;;  %1439 = vmatprep.subr.bf16.mxu1 %v2459_v46  ;;  %v1277_v46 = vunpack.c.h.bf16 %v2305_v47 }
 0x618   :  { %1428 = vmatprep.mubr.bf16.mxu0 %v2694_v42  ;;  %1469 = vmatprep.mubr.bf16.mxu1 %v2694_v42  ;;  %v1276_v42 = vunpack.c.l.bf16 %v2305_v47 }
 0x61a   :  { %1399 = vmatpush1.bf16.msra.mxu0 %v2464_v41  ;;  %1440 = vmatpush1.bf16.msra.mxu1 %v2467_v59 }
 0x61b   :  { %1400 = vmatprep.subr.bf16.mxu0 %v2470_v51  ;;  %1441 = vmatprep.subr.bf16.mxu1 %v2473_v8 }
 0x61e   :  { %1401 = vmatpush1.bf16.msra.mxu0 %v2476_v9  ;;  %1442 = vmatpush1.bf16.msra.mxu1 %v2479_v10 }
 0x61f   :  { %1402 = vmatprep.subr.bf16.mxu0 %v2482_v11  ;;  %1443 = vmatprep.subr.bf16.mxu1 %v2485_v12 }
 0x622   :  { %1403 = vmatpush1.bf16.msra.mxu0 %v2488_v13  ;;  %1444 = vmatpush1.bf16.msra.mxu1 %v2537_v45  ;;  %v1279_v45 = vunpack.c.h.bf16 %v2698_v60 }
 0x623   :  { %1404 = vmatprep.subr.bf16.mxu0 %v2540_v4  ;;  %1445 = vmatprep.subr.bf16.mxu1 %v2543_v55  ;;  %v1278_v55 = vunpack.c.l.bf16 %v2698_v60 }
 0x626   :  { %1405 = vmatpush1.bf16.msra.mxu0 %v2546_v52  ;;  %1446 = vmatpush1.bf16.msra.mxu1 %v2549_v54 }
 0x627   :  { %1406 = vmatprep.subr.bf16.mxu0 %v2552_v57  ;;  %1447 = vmatprep.subr.bf16.mxu1 %v2555_v32 }
 0x62a   :  { %1407 = vmatpush1.bf16.msra.mxu0 %v2558_v58  ;;  %1448 = vmatpush1.bf16.msra.mxu1 %v2561_v24 }
 0x62b   :  { %1408 = vmatprep.subr.bf16.mxu0 %v2564_v26  ;;  %1449 = vmatprep.subr.bf16.mxu1 %v2567_v27 }
 0x62e   :  { %1409 = vmatpush1.bf16.msra.mxu0 %v2570_v28  ;;  %1450 = vmatpush1.bf16.msra.mxu1 %v2573_v29 }
 0x62f   :  { %1410 = vmatprep.subr.bf16.mxu0 %v2576_v30  ;;  %1451 = vmatprep.subr.bf16.mxu1 %v2579_v31 }
 0x632   :  { %1411 = vmatpush1.bf16.msra.mxu0 %v2582_v33  ;;  %1452 = vmatpush1.bf16.msra.mxu1 %v2585_v34 }
 0x633   :  { %1750 = vmatprep.subr.bf16.mxu0 %v2028_v17 }
 0x6d5   :  { %v1314_v53 = vpop.f32.mrf.mxu0  ;;  %v1355_v44 = vpop.f32.mrf.mxu1 }
 0x6d6   :  { %v1315_v1 = vadd.f32 %v1314_v53, %v1276_v42  ;;  %v1356_v52 = vadd.f32 %v1355_v44, %v1278_v55 }
 0x6d7   :  { %v1316_v41 = vpop.f32.mrf.mxu0  ;;  %v1357_v59 = vpop.f32.mrf.mxu1 }
 0x6d8   :  { %v1710_v51 = vmul.f32 -1.442695, %v1315_v1  ;;  %v1317_v8 = vadd.f32 %v1316_v41, %v1277_v46  ;;  %v1358_v4 = vadd.f32 %v1357_v59, %v1279_v45 }
 0x6d9   :  { %v1318_v9 = vpop.f32.mrf.mxu0  ;;  %v1359_v10 = vpop.f32.mrf.mxu1 }
 0x6da   :  { %1938 = vpow2.f32 %v1710_v51  ;;  %v1711_v11 = vmul.f32 -1.442695, %v1317_v8  ;;  %v1712_v54 = vmul.f32 -1.442695, %v1358_v4 }
 0x6db   :  { %v1319_v12 = vpop.f32.mrf.mxu0  ;;  %v1360_v13 = vpop.f32.mrf.mxu1 }
 0x6dc   :  { %1940 = vpow2.f32 %v1711_v11 }
 0x6dd   :  { %1942 = vtanh.f32 %v1356_v52  ;;  %v1716_v52 = vld [vmem:[%s2678_s5] ss:$0 sm:$0xff] }
 0x6de   :  { %1944 = vpow2.f32 %v1712_v54 }
 0x6e7   :  { %v1939_v57 = vpop.eup %1938 }
 0x6e8   :  { %v1365_v47 = vadd.f32 1.0, %v1939_v57 }
 0x6e9   :  { %v1941_v32 = vpop.eup %1940 }
 0x6ea   :  { %1946 = vrcp.f32 %v1365_v47  ;;  %v1371_v58 = vadd.f32 1.0, %v1941_v32  ;;  %v1943_v24 = vpop.eup %1942 }
 0x6eb   :  { %v1945_v26 = vpop.eup %1944 }
 0x6ec   :  { %1948 = vrcp.f32 %v1371_v58  ;;  %v1378_v30 = vadd.f32 1.0, %v1945_v26 }
 0x6ee   :  { %1950 = vrcp.f32 %v1378_v30 }
 0x6f7   :  { %v1947_v27 = vpop.eup %1946 }
 0x6f8   :  { %v1382_v28 = vmul.f32 %v1947_v27, %v1943_v24 }
 0x6f9   :  { %v1949_v29 = vpop.eup %1948 }
 0x6fa   :  { %v1381_v31 = vmul.f32 %v1949_v29, %v2595_v35 }
 0x6fb   :  { %v1951_v34 = vpop.eup %1950 }
 0x6fc   :  { %v2635_v33 = vadd.f32 %v1382_v28, %v1381_v31 }
 0x6fe   :  { %1952 = vtanh.f32 %v2635_v33 }
 0x70b   :  { %v1953_v39 = vpop.eup %1952 }
 0x70c   :  { %v1385_v40 = vmul.f32 %v1953_v39, %v1951_v34 }
 0x70e   :  { %v1386_v15 = vpack.c.bf16 %v1385_v40, %v1385_v40 }
 0x710   :  { %1429 = vmatmul.mubr.bf16.vlgmr.msra.gmra.mxu0 %v1386_v15  ;;  %1470 = vmatmul.mubr.bf16.vlgmr.msra.gmra.mxu1 %v1386_v15 }
 0x711   :  { %1751 = vmatpush3.bf16.msra.mxu0 %v1834_v16  ;;  %1766 = vmatprep.mubr.msk.bf16.mxu0 %vm2029_vm1, %v2028_v17 }
 0x712   :  { %1752 = vmatprep.subr.bf16.mxu0 %v2028_v17 }
 0x715   :  { %1753 = vmatpush3.bf16.msra.mxu0 %v1835_v18 }
 0x716   :  { %1754 = vmatprep.subr.bf16.mxu0 %v2028_v17 }
 0x719   :  { %1755 = vmatpush3.bf16.msra.mxu0 %v1836_v19 }
 0x71a   :  { %1756 = vmatprep.subr.bf16.mxu0 %v2028_v17 }
 0x71d   :  { %1757 = vmatpush3.bf16.msra.mxu0 %v1837_v20 }
 0x71e   :  { %1758 = vmatprep.subr.bf16.mxu0 %v2028_v17 }
 0x721   :  { %1759 = vmatpush3.bf16.msra.mxu0 %v1838_v21 }
 0x722   :  { %1760 = vmatprep.subr.bf16.mxu0 %v2028_v17 }
 0x725   :  { %1761 = vmatpush3.bf16.msra.mxu0 %v1839_v49 }
 0x726   :  { %1762 = vmatprep.subr.bf16.mxu0 %v2028_v17 }
 0x729   :  { %1763 = vmatpush3.bf16.msra.mxu0 %v1840_v22 }
 0x72a   :  { %1764 = vmatprep.subr.bf16.mxu0 %v2028_v17 }
 0x72d   :  { %1765 = vmatpush3.bf16.msra.mxu0 %v1841_v23 }
 0x7d0   :  { %v1430_v61 = vpop.f32.mrf.mxu0  ;;  %v1471_v3 = vpop.f32.mrf.mxu1 }
 0x7d1   :  { %v1431_v2 = vadd.f32 %v1430_v61, %v1392_v7  ;;  %v1472_v42 = vadd.f32 %v1471_v3, %v1394_v38 }
 0x7d2   :  { %v1432_v43 = vpop.f32.mrf.mxu0  ;;  %v1473_v50 = vpop.f32.mrf.mxu1 }
 0x7d3   :  { %v1713_v63 = vmul.f32 -1.442695, %v1431_v2  ;;  %v1433_v0 = vadd.f32 %v1432_v43, %v1393_v62  ;;  %v1474_v37 = vadd.f32 %v1473_v50, %v1395_v36 }
 0x7d4   :  { %v1434_v14 = vpop.f32.mrf.mxu0  ;;  %v1475_v56 = vpop.f32.mrf.mxu1 }
 0x7d5   :  { %1954 = vpow2.f32 %v1713_v63  ;;  %v1714_v48 = vmul.f32 -1.442695, %v1433_v0  ;;  %v1715_v53 = vmul.f32 -1.442695, %v1474_v37 }
 0x7d6   :  { %v1435_v25 = vpop.f32.mrf.mxu0  ;;  %v1476_v35 = vpop.f32.mrf.mxu1 }
 0x7d7   :  { %1956 = vpow2.f32 %v1714_v48 }
 0x7d8   :  { %1958 = vtanh.f32 %v1472_v42 }
 0x7d9   :  { %1960 = vpow2.f32 %v1715_v53 }
 0x7e2   :  { %v1955_v44 = vpop.eup %1954 }
 0x7e3   :  { %v1481_v1 = vadd.f32 1.0, %v1955_v44 }
 0x7e4   :  { %v1957_v46 = vpop.eup %1956 }
 0x7e5   :  { %1962 = vrcp.f32 %v1481_v1  ;;  %v1487_v41 = vadd.f32 1.0, %v1957_v46  ;;  %v1959_v59 = vpop.eup %1958 }
 0x7e6   :  { %v1961_v51 = vpop.eup %1960 }
 0x7e7   :  { %1964 = vrcp.f32 %v1487_v41  ;;  %v1494_v11 = vadd.f32 1.0, %v1961_v51 }
 0x7e9   :  { %1966 = vrcp.f32 %v1494_v11 }
 0x7f2   :  { %v1963_v8 = vpop.eup %1962 }
 0x7f3   :  { %v1498_v9 = vmul.f32 %v1963_v8, %v1959_v59 }
 0x7f4   :  { %v1965_v10 = vpop.eup %1964 }
 0x7f5   :  { %v1497_v12 = vmul.f32 %v1965_v10, %v2635_v33 }
 0x7f6   :  { %v1967_v60 = vpop.eup %1966 }
 0x7f7   :  { %v1499_v13 = vadd.f32 %v1498_v9, %v1497_v12 }
 0x7f9   :  { %1968 = vtanh.f32 %v1499_v13 }
 0x806   :  { %v1969_v45 = vpop.eup %1968 }
 0x807   :  { %v1501_v4 = vmul.f32 %v1969_v45, %v1967_v60 }
 0x809   :  { %v1502_v55 = vpack.c.bf16 %v1501_v4, %v1501_v4 }
 0x80b   :  { %1767 = vmatmul.mubr.bf16.vlgmr.msra.gmra.mxu0 %v1502_v55 }
 0x8cb   :  { %v1608_v54 = vpop.f32.mrf.mxu0 }
 0x8cc   :  { %v1609_v57 = vadd.f32 %v1716_v52, %v1608_v54 }
 0x8cd   :  { %v1768_v47 = vpop.f32.mrf.mxu0 }
 0x8ce   :  { %1615 = vst.msk [vmem:[%s2679_s6] sm:$0xff] %vm1614_vm2, %v1609_v57 }
 0x8cf   :  { %v1611_v32 = vpop.f32.mrf.mxu0 }
 0x8d1   :  { %v1769_v58 = vpop.f32.mrf.mxu0 }
 0x8d2   :  { %1620 = vsyncpa [#allocation4], 1 }

</bundles_post_ra>
